<compile_context>
chip_gen: v5e
topology: v5e:2x2
jax: 0.10.0
libtpu: 0.0.40
codegen_flags: <defaults>
</compile_context>

<pallas_src>
import jax
import jax.numpy as jnp
from jax.experimental import pallas as pl
from jax.experimental.pallas import tpu as pltpu

_SUBLANES = 8  # quantum for the second-to-last block dimension


def _softmax_classes_kernel(x_ref, o_ref):
    # x_ref / o_ref: VMEM tile of shape (1, p_tile, C).
    # Softmax over the class axis (last / lane axis); priors live on sublanes.
    x = x_ref[...].astype(jnp.float32)
    m = jnp.max(x, axis=-1, keepdims=True)
    e = jnp.exp(x - m)
    s = jnp.sum(e, axis=-1, keepdims=True)
    o_ref[...] = (e / s).astype(o_ref.dtype)


def ssd_box_head_forward(cls_logits, bbox_pred, *, p_tile=4096, out_dtype=None):
    """Inference forward of SSDBoxHead (before the external PostProcessor).

    cls_logits: [B, P, C] float   (batch, num_priors, num_classes)
    bbox_pred : [B, P, 4] float   (pure pass-through, no compute)
    returns ((scores, bbox_pred), {})  matching _forward_test semantics.
    """
    B, P, C = cls_logits.shape
    if out_dtype is None:
        out_dtype = cls_logits.dtype

    # ---- prior-tile sizing (no padding, no layout plumbing) ----------------
    # Tile must be a sublane multiple; never larger than P rounded up to 8;
    # and at batch=1 keep >= 2 grid steps so both v7x TensorCores stay busy.
    p_ceil = -(-P // _SUBLANES) * _SUBLANES
    p_tile = max(_SUBLANES, min((p_tile // _SUBLANES) * _SUBLANES, p_ceil))
    if B == 1 and p_tile >= P:
        p_tile = max(_SUBLANES, (-(-(P // 2) // _SUBLANES)) * _SUBLANES)
    n_pt = pl.cdiv(P, p_tile)

    scores = pl.pallas_call(
        _softmax_classes_kernel,
        out_shape=jax.ShapeDtypeStruct((B, P, C), out_dtype),
        grid_spec=pltpu.PrefetchScalarGridSpec(
            num_scalar_prefetch=0,
            grid=(B, n_pt),
            in_specs=[pl.BlockSpec((1, p_tile, C), lambda b, p: (b, p, 0))],
            out_specs=pl.BlockSpec((1, p_tile, C), lambda b, p: (b, p, 0)),
        ),
        compiler_params=pltpu.CompilerParams(
            dimension_semantics=("parallel", "parallel"),
        ),
    )(cls_logits)

    # TODO(synk): PostProcessor (per-image score threshold / top-k / NMS) and
    # the training-path MultiBoxLoss (hard-negative mining) have no clean
    # Pallas equivalent.  The first post-processor stage (drop background
    # column, per-prior max foreground score / threshold mask) could be fused
    # into the kernel epilogue as a small extra output to cut the hot
    # writeback by ~C x once a downstream consumer exists for it.
    detections = (scores, bbox_pred)
    return detections, {}


if __name__ == "__main__":
    key = jax.random.PRNGKey(0)
    k1, k2 = jax.random.split(key)

    # SSD-flavoured small shapes: 21 classes (VOC); prior count NOT a multiple
    # of the tile so the ragged-last-tile masking path is exercised.
    B, P, C = 2, 1200, 21
    cls_logits = jax.random.normal(k1, (B, P, C), dtype=jnp.float32)
    bbox_pred = jax.random.normal(k2, (B, P, 4), dtype=jnp.float32)

    (scores, boxes), loss_dict = ssd_box_head_forward(
        cls_logits, bbox_pred, p_tile=512
    )
    scores = jax.block_until_ready(scores)
    boxes = jax.block_until_ready(boxes)

    # sanity check against the pure-JAX reference softmax(dim=2)
    ref = jax.nn.softmax(cls_logits, axis=2)
    assert scores.shape == (B, P, C)
    assert jnp.allclose(scores, ref, atol=1e-5, rtol=1e-5)
    assert boxes.shape == (B, P, 4)
    assert loss_dict == {}

    print("KERNEL_OK")
</pallas_src>

<mosaic_0001>
module attributes {stable_mosaic.version = 11 : i64} {
  func.func @_softmax_classes_kernel(%arg0: i32, %arg1: i32, %arg2: memref<1x512x21xf32, #tpu.memory_space<vmem>>, %arg3: memref<1x512x21xf32, #tpu.memory_space<vmem>>) attributes {dimension_semantics = [#tpu.dimension_semantics<parallel>, #tpu.dimension_semantics<parallel>], iteration_bounds = array<i64: 2, 3>, scalar_prefetch = 0 : i64, scratch_operands = 0 : i64, tpu.core_type = #tpu.core_type<tc>, window_params = [{transform_indices = @transform_0, window_bounds = array<i64: 1, 512, 21>}, {transform_indices = @transform_1, window_bounds = array<i64: 1, 512, 21>}]} {
    %c0 = arith.constant 0 : index
    %c0_0 = arith.constant 0 : index
    %c0_1 = arith.constant 0 : index
    %0 = vector.load %arg2[%c0, %c0_0, %c0_1] : memref<1x512x21xf32, #tpu.memory_space<vmem>>, vector<1x512x21xf32>
    %cst = arith.constant dense<0xFF800000> : vector<1x512xf32>
    %1 = vector.multi_reduction <maximumf>, %0, %cst [2] : vector<1x512x21xf32> to vector<1x512xf32>
    %2 = vector.shape_cast %1 : vector<1x512xf32> to vector<1x512x1xf32>
    %3 = vector.broadcast %2 : vector<1x512x1xf32> to vector<1x512x21xf32>
    %4 = arith.subf %0, %3 : vector<1x512x21xf32>
    %5 = math.exp %4 : vector<1x512x21xf32>
    %cst_2 = arith.constant dense<0.000000e+00> : vector<1x512xf32>
    %6 = vector.multi_reduction <add>, %5, %cst_2 [2] : vector<1x512x21xf32> to vector<1x512xf32>
    %7 = vector.shape_cast %6 : vector<1x512xf32> to vector<1x512x1xf32>
    %8 = vector.broadcast %7 : vector<1x512x1xf32> to vector<1x512x21xf32>
    %9 = arith.divf %5, %8 : vector<1x512x21xf32>
    %c0_3 = arith.constant 0 : index
    %c0_4 = arith.constant 0 : index
    %c0_5 = arith.constant 0 : index
    %10 = vector.load %arg3[%c0_3, %c0_4, %c0_5] : memref<1x512x21xf32, #tpu.memory_space<vmem>>, vector<1x512x21xf32>
    tpu.vector_store %arg3[%c0_3, %c0_4, %c0_5], %9 {strides = array<i32>} : memref<1x512x21xf32, #tpu.memory_space<vmem>>, vector<1x512x21xf32>,
    return
  }
  func.func @transform_0(%arg0: i32, %arg1: i32) -> (i32, i32, i32) {
    %c0_i32 = arith.constant 0 : i32
    %c0_i32_0 = arith.constant 0 : i32
    return %arg0, %arg1, %c0_i32 : i32, i32, i32
  }
  func.func @transform_1(%arg0: i32, %arg1: i32) -> (i32, i32, i32) {
    %c0_i32 = arith.constant 0 : i32
    %c0_i32_0 = arith.constant 0 : i32
    return %arg0, %arg1, %c0_i32 : i32, i32, i32
  }
}

</mosaic_0001>

<bundles_post_ra>
// kernel: tpu_custom_call.1
= control target key start
LH: loop header
LB: loop body
LE: loop exit
PB: predicated region body
PF: predicated region fallthrough
CT: control target
= control target key end

     0   :  { %s2728_s6 = smov 0   ;;  %s2730_s7 = smov 0   ;;  %s4923_s0 = inlined_call_operand.vmem [shape: f32[2,1200,21], index: 0, kind: input, shape index: {}]   ;;  %s4924_s1 = inlined_call_operand.vmem [shape: f32[2,1200,21], index: 1, kind: output, shape index: {}]  }
   0x1   :  { %s2732_s8 = smov 0   ;;  %s2734_s9 = smov 0  }
   0x2   :  { %s2736_s10 = smov 0   ;;  %s2738_s11 = smov 0  }
   0x3   :  { %s2740_s12 = smov 0  }
   0x4 LB: > { %s20_s13 = sadd.s32 1, %s2676_s10  ;;  %s23_s14 = sadd.s32 1, %s2680_s11  ;;  %s2684_s12 = sphi %s2740_s12, %s11_s12   ;;  %s2680_s11 = sphi %s2738_s11, %s5246_s11   ;;  %s2676_s10 = sphi %s2736_s10, %s5245_s10   ;;  %s2672_s9 = sphi %s2734_s9, %s5244_s9   ;;  %s2668_s8 = sphi %s2732_s8, %s5243_s8   ;;  %s2664_s7 = sphi %s2730_s7, %s5242_s7   ;;  %s2660_s6 = sphi %s2728_s6, %s5241_s6  }
   0x5   : > { %p21_p0 = scmp.ge.s32.totalorder %s20_s13, 3  ;;  %s2193_s15 = sadd.s32 4294967295, %s2684_s12  }
   0x6   : > { %p70_p1 = scmp.ne.s32.totalorder %s2664_s7, %s2660_s6  ;;  %p71_p2 = scmp.eq.s32.totalorder %s2193_s15, 5 }
   0x7   : > { %s5248_s13 = smov (%p21_p0, %s20_s13), 0  ;;  %s5250_s14 = smov (!%p21_p0, %s23_s14), %s2680_s11 }
   0x8   : > { %s56_s16 = ssub.s32 %s2676_s10, %s5248_s13  ;;  %p25_p3 = scmp.ge.s32.totalorder %s5250_s14, 2 }
   0x9   : > { %p2197_p4 = scmp.ge.s32.totalorder %s2684_s12, 1  ;;  %p2772_p5 = por %p71_p2, %p70_p1 }
   0xa   : > { %p116_p6 = scmp.lt.s32.totalorder %s2684_s12, 7  ;;  %s5252_s14 = smov (%p25_p3, %s5250_s14), 0 }
   0xb   : > { %s55_s18 = ssub.s32 %s2680_s11, %s5252_s14  ;;  %s60_s20 = sadd.s32 1, %s2664_s7 }
   0xc   : > { %p117_p7 = pnand %p2197_p4, %p116_p6  ;;  %s57_s19 = sor.u32 %s56_s16, %s55_s18 }
   0xd   : > { %p58_p8 = scmp.eq.s32.totalorder %s57_s19, 0 }
   0xe   : > { %120 = sbr.rel (%p117_p7) target bundleno = 616 (0x268), region = 24 }
   0xf   : > { %s2783_s21 = scalar_select %p58_p8, %s2664_s7, %s60_s20  }
  0x13   : > { %s2785_s22 = sshll.u32 %s2668_s8, 6  ;;  %p148_p9 = scmp.lt.s32.totalorder %s2672_s9, 1  ;;  %vm230_vm0 = vcmask 171008  }
  0x14   : > { %p150_p10 = scmp.lt.s32.totalorder %s2785_s22, 149  ;;  %s140_s2 = sand.u32 1, %s2660_s6  }
  0x15   : > { %s149_s23 = scalar_select %p148_p9, %s2672_s9, 1 }
  0x16   : > { %s151_s24 = scalar_select %p150_p10, %s2785_s22, 149 }
  0x17   : > { %s2220_s25 = smul.u32 150, %s149_s23  ;;  %s3648_s3 = sshll.u32 %s140_s2, 9 }
  0x18   : > { %s3688_s4 = scalar_lea.vmem [#allocation2], %s3648_s3   ;;  %s1839_s5 = ssub.s32 (%p2772_p5), 150, %s2785_s22 }
  0x19   : > { %s153_s26 = sadd.s32 %s2220_s25, %s151_s24  ;;  %s2221_s6 = smul.u32 (%p2772_p5), 150, %s2672_s9 }
  0x1a   : > { %s2200_s27 = sshll.u32 %s153_s26, 3  ;;  %p1840_p11 = scmp.lt.s32.totalorder (%p2772_p5), %s1839_s5, 64 }
  0x1b   : > { %s2794_s30 = scalar_lea.vmem %s4923_s0, %s2200_s27  ;;  %s1845_s8 = sadd.s32 (%p2772_p5), %s2221_s6, %s2785_s22 }
  0x1c   : > { %v2797_v0 = vld [vmem:[%s2794_s30 + $0x20] sm:$0xff]  ;;  %v2800_v1 = vld [vmem:[%s2794_s30 + $0x10] sm:$0xff]  ;;  %v2812_v6 = vld [vmem:[%s2794_s30 + $0x28] sm:$0xff]  ;;  %s2205_s15 = sshll.u32 (%p2772_p5), %s1845_s8, 3 }
  0x1d   : > { %v2803_v2 = vld [vmem:[%s2794_s30] sm:$0xff]  ;;  %v243_v3 = vsel %vm230_vm0, %v2797_v0, -inf  ;;  %v237_v4 = vsel %vm230_vm0, %v2800_v1, -inf  ;;  %v2815_v7 = vld [vmem:[%s2794_s30 + $0x18] sm:$0xff]  ;;  %v2818_v8 = vld [vmem:[%s2794_s30 + $0x8] sm:$0xff]  ;;  %v246_v9 = vsel %vm230_vm0, %v2812_v6, -inf  ;;  %s4780_s20 = scalar_lea.vmem (%p2772_p5), %s4924_s1, %s2205_s15  }
  0x1e   : > { %v231_v5 = vsel %vm230_vm0, %v2803_v2, -inf  ;;  %244 = vmax.xlane.f32.xlu2 %v243_v3  ;;  %238 = vmax.xlane.f32.xlu1 %v237_v4  ;;  %v240_v10 = vsel %vm230_vm0, %v2815_v7, -inf  ;;  %v234_v11 = vsel %vm230_vm0, %v2818_v8, -inf  ;;  %v2827_v12 = vld [vmem:[%s2794_s30 + $0x40] sm:$0xff]  ;;  %v2830_v13 = vld [vmem:[%s2794_s30 + $0x38] sm:$0xff]  ;;  %v2833_v14 = vld [vmem:[%s2794_s30 + $0x30] sm:$0xff] }
  0x1f   : > { %232 = vmax.xlane.f32.xlu0 %v231_v5  ;;  %v255_v15 = vsel %vm230_vm0, %v2827_v12, -inf  ;;  %v252_v16 = vsel %vm230_vm0, %v2830_v13, -inf  ;;  %v249_v17 = vsel %vm230_vm0, %v2833_v14, -inf  ;;  %v2842_v18 = vld [vmem:[%s2794_s30 + $0x58] sm:$0xff]  ;;  %v2845_v19 = vld [vmem:[%s2794_s30 + $0x50] sm:$0xff]  ;;  %v2848_v20 = vld [vmem:[%s2794_s30 + $0x48] sm:$0xff] }
  0x20   : > { %v264_v21 = vsel %vm230_vm0, %v2842_v18, -inf  ;;  %v261_v22 = vsel %vm230_vm0, %v2845_v19, -inf  ;;  %v258_v23 = vsel %vm230_vm0, %v2848_v20, -inf  ;;  %v2857_v24 = vld [vmem:[%s2794_s30 + $0x70] sm:$0xff]  ;;  %v2860_v25 = vld [vmem:[%s2794_s30 + $0x68] sm:$0xff]  ;;  %v2863_v26 = vld [vmem:[%s2794_s30 + $0x60] sm:$0xff] }
  0x21   : > { %v273_v27 = vsel %vm230_vm0, %v2857_v24, -inf  ;;  %v270_v28 = vsel %vm230_vm0, %v2860_v25, -inf  ;;  %v267_v29 = vsel %vm230_vm0, %v2863_v26, -inf  ;;  %v2872_v30 = vld [vmem:[%s2794_s30 + $0x88] sm:$0xff]  ;;  %v2875_v31 = vld [vmem:[%s2794_s30 + $0x80] sm:$0xff]  ;;  %v2878_v32 = vld [vmem:[%s2794_s30 + $0x78] sm:$0xff] }
  0x22   : > { %v282_v33 = vsel %vm230_vm0, %v2872_v30, -inf  ;;  %v279_v34 = vsel %vm230_vm0, %v2875_v31, -inf  ;;  %v276_v35 = vsel %vm230_vm0, %v2878_v32, -inf  ;;  %v2887_v36 = vld [vmem:[%s2794_s30 + $0xa0] sm:$0xff]  ;;  %v2890_v37 = vld [vmem:[%s2794_s30 + $0x98] sm:$0xff]  ;;  %v2893_v38 = vld [vmem:[%s2794_s30 + $0x90] sm:$0xff] }
  0x23   : > { %v291_v39 = vsel %vm230_vm0, %v2887_v36, -inf  ;;  %v288_v40 = vsel %vm230_vm0, %v2890_v37, -inf  ;;  %v285_v41 = vsel %vm230_vm0, %v2893_v38, -inf  ;;  %v2902_v42 = vld [vmem:[%s2794_s30 + $0xb8] sm:$0xff]  ;;  %v2905_v43 = vld [vmem:[%s2794_s30 + $0xb0] sm:$0xff]  ;;  %v2908_v44 = vld [vmem:[%s2794_s30 + $0xa8] sm:$0xff] }
  0x24   : > { %v300_v45 = vsel %vm230_vm0, %v2902_v42, -inf  ;;  %v297_v46 = vsel %vm230_vm0, %v2905_v43, -inf  ;;  %v294_v47 = vsel %vm230_vm0, %v2908_v44, -inf  ;;  %v2917_v48 = vld [vmem:[%s2794_s30 + $0xd0] sm:$0xff]  ;;  %v2920_v49 = vld [vmem:[%s2794_s30 + $0xc8] sm:$0xff]  ;;  %v2923_v50 = vld [vmem:[%s2794_s30 + $0xc0] sm:$0xff] }
  0x25   : > { %v309_v51 = vsel %vm230_vm0, %v2917_v48, -inf  ;;  %v306_v52 = vsel %vm230_vm0, %v2920_v49, -inf  ;;  %v303_v53 = vsel %vm230_vm0, %v2923_v50, -inf  ;;  %v2932_v54 = vld [vmem:[%s2794_s30 + $0xe8] sm:$0xff]  ;;  %v2935_v55 = vld [vmem:[%s2794_s30 + $0xe0] sm:$0xff]  ;;  %v2938_v56 = vld [vmem:[%s2794_s30 + $0xd8] sm:$0xff] }
  0x26   : > { %247 = vmax.xlane.f32.xlu2 %v246_v9  ;;  %241 = vmax.xlane.f32.xlu1 %v240_v10  ;;  %v318_v57 = vsel %vm230_vm0, %v2932_v54, -inf  ;;  %v315_v58 = vsel %vm230_vm0, %v2935_v55, -inf  ;;  %v312_v59 = vsel %vm230_vm0, %v2938_v56, -inf  ;;  %v2947_v60 = vld [vmem:[%s2794_s30 + $0x100] sm:$0xff]  ;;  %v2950_v61 = vld [vmem:[%s2794_s30 + $0xf8] sm:$0xff]  ;;  %v2953_v62 = vld [vmem:[%s2794_s30 + $0xf0] sm:$0xff] }
  0x27   : > { %235 = vmax.xlane.f32.xlu0 %v234_v11  ;;  %v327_v63 = vsel %vm230_vm0, %v2947_v60, -inf  ;;  %v324_v3 = vsel %vm230_vm0, %v2950_v61, -inf  ;;  %v321_v4 = vsel %vm230_vm0, %v2953_v62, -inf  ;;  %v2962_v5 = vld [vmem:[%s2794_s30 + $0x118] sm:$0xff]  ;;  %v2965_v9 = vld [vmem:[%s2794_s30 + $0x110] sm:$0xff]  ;;  %v2968_v10 = vld [vmem:[%s2794_s30 + $0x108] sm:$0xff] }
  0x28   : > { %4990 = vst [vmem:[#allocation3_spill] sm:$0xff] %v2962_v5  ;;  %v336_v11 = vsel %vm230_vm0, %v2962_v5, -inf  ;;  %v3128_v5 = vld [vmem:[%s2794_s30 + $0x1e8] sm:$0xff] }
  0x29   : > { %5013 = vst [vmem:[#allocation26_spill] sm:$0xff] %v3128_v5 }
  0x2e   : > { %256 = vmax.xlane.f32.xlu2 %v255_v15  ;;  %253 = vmax.xlane.f32.xlu1 %v252_v16  ;;  %v333_v15 = vsel %vm230_vm0, %v2965_v9, -inf  ;;  %v330_v16 = vsel %vm230_vm0, %v2968_v10, -inf }
  0x2f   : > { %250 = vmax.xlane.f32.xlu0 %v249_v17  ;;  %v2977_v17 = vld [vmem:[%s2794_s30 + $0x130] sm:$0xff] }
  0x30   : > { %4991 = vst [vmem:[#allocation4_spill] sm:$0xff] %v2977_v17 }
  0x36   : > { %265 = vmax.xlane.f32.xlu2 %v264_v21  ;;  %262 = vmax.xlane.f32.xlu1 %v261_v22  ;;  %v2980_v21 = vld [vmem:[%s2794_s30 + $0x128] sm:$0xff]  ;;  %v2983_v22 = vld [vmem:[%s2794_s30 + $0x120] sm:$0xff] }
  0x37   : > { %259 = vmax.xlane.f32.xlu0 %v258_v23  ;;  %v345_v23 = vsel %vm230_vm0, %v2977_v17, -inf  ;;  %v3125_v17 = vld [vmem:[%s2794_s30 + $0x1f0] sm:$0xff] }
  0x38   : > { %5012 = vst [vmem:[#allocation25_spill] sm:$0xff] %v3125_v17 }
  0x3e   : > { %274 = vmax.xlane.f32.xlu2 %v273_v27  ;;  %271 = vmax.xlane.f32.xlu1 %v270_v28  ;;  %v342_v27 = vsel %vm230_vm0, %v2980_v21, -inf  ;;  %v339_v28 = vsel %vm230_vm0, %v2983_v22, -inf }
  0x3f   : > { %268 = vmax.xlane.f32.xlu0 %v267_v29  ;;  %v2992_v29 = vld [vmem:[%s2794_s30 + $0x148] sm:$0xff] }
  0x40   : > { %4992 = vst [vmem:[#allocation5_spill] sm:$0xff] %v2992_v29 }
  0x46   : > { %283 = vmax.xlane.f32.xlu2 %v282_v33  ;;  %280 = vmax.xlane.f32.xlu1 %v279_v34  ;;  %v2995_v33 = vld [vmem:[%s2794_s30 + $0x140] sm:$0xff]  ;;  %v2998_v34 = vld [vmem:[%s2794_s30 + $0x138] sm:$0xff] }
  0x47   : > { %277 = vmax.xlane.f32.xlu0 %v276_v35  ;;  %4993 = vst [vmem:[#allocation6_spill] sm:$0xff] %v2995_v33  ;;  %v354_v35 = vsel %vm230_vm0, %v2992_v29, -inf }
  0x48   : > { %4994 = vst [vmem:[#allocation7_spill] sm:$0xff] %v2998_v34 }
  0x4e   : > { %292 = vmax.xlane.f32.xlu2 %v291_v39  ;;  %289 = vmax.xlane.f32.xlu1 %v288_v40  ;;  %v351_v39 = vsel %vm230_vm0, %v2995_v33, -inf  ;;  %v348_v40 = vsel %vm230_vm0, %v2998_v34, -inf }
  0x4f   : > { %286 = vmax.xlane.f32.xlu0 %v285_v41  ;;  %v3007_v41 = vld [vmem:[%s2794_s30 + $0x160] sm:$0xff] }
  0x50   : > { %4995 = vst [vmem:[#allocation8_spill] sm:$0xff] %v3007_v41 }
  0x56   : > { %301 = vmax.xlane.f32.xlu2 %v300_v45  ;;  %298 = vmax.xlane.f32.xlu1 %v297_v46  ;;  %v3010_v45 = vld [vmem:[%s2794_s30 + $0x158] sm:$0xff]  ;;  %v3013_v46 = vld [vmem:[%s2794_s30 + $0x150] sm:$0xff] }
  0x57   : > { %295 = vmax.xlane.f32.xlu0 %v294_v47  ;;  %4996 = vst [vmem:[#allocation9_spill] sm:$0xff] %v3010_v45  ;;  %v363_v47 = vsel %vm230_vm0, %v3007_v41, -inf }
  0x58   : > { %4997 = vst [vmem:[#allocation10_spill] sm:$0xff] %v3013_v46 }
  0x5e   : > { %310 = vmax.xlane.f32.xlu2 %v309_v51  ;;  %307 = vmax.xlane.f32.xlu1 %v306_v52  ;;  %v360_v51 = vsel %vm230_vm0, %v3010_v45, -inf  ;;  %v357_v52 = vsel %vm230_vm0, %v3013_v46, -inf  ;;  %v3105_v46 = vld [vmem:[%s2794_s30 + $0x1d0] sm:$0xff] }
  0x5f   : > { %304 = vmax.xlane.f32.xlu0 %v303_v53  ;;  %v3022_v53 = vld [vmem:[%s2794_s30 + $0x178] sm:$0xff]  ;;  %5011 = vst [vmem:[#allocation24_spill] sm:$0xff] %v3105_v46 }
  0x60   : > { %4998 = vst [vmem:[#allocation11_spill] sm:$0xff] %v3022_v53 }
  0x66   : > { %319 = vmax.xlane.f32.xlu2 %v318_v57  ;;  %316 = vmax.xlane.f32.xlu1 %v315_v58  ;;  %v3025_v57 = vld [vmem:[%s2794_s30 + $0x170] sm:$0xff] }
  0x67   : > { %313 = vmax.xlane.f32.xlu0 %v312_v59  ;;  %4999 = vst [vmem:[#allocation12_spill] sm:$0xff] %v3025_v57 }
  0x6e   : > { %328 = vmax.xlane.f32.xlu2 %v327_v63  ;;  %325 = vmax.xlane.f32.xlu1 %v324_v3  ;;  %v3032_v63 = vld [vmem:[%s2794_s30 + $0x168] sm:$0xff] }
  0x6f   : > { %322 = vmax.xlane.f32.xlu0 %v321_v4  ;;  %5000 = vst [vmem:[#allocation13_spill] sm:$0xff] %v3032_v63  ;;  %v372_v4 = vsel %vm230_vm0, %v3022_v53, -inf }
  0x76   : > { %337 = vmax.xlane.f32.xlu2 %v336_v11  ;;  %334 = vmax.xlane.f32.xlu1 %v333_v15  ;;  %v369_v11 = vsel %vm230_vm0, %v3025_v57, -inf  ;;  %v366_v15 = vsel %vm230_vm0, %v3032_v63, -inf  ;;  %v3084_v63 = vld [vmem:[%s2794_s30 + $0x1b8] sm:$0xff] }
  0x77   : > { %331 = vmax.xlane.f32.xlu0 %v330_v16  ;;  %v3041_v16 = vld [vmem:[%s2794_s30 + $0x190] sm:$0xff]  ;;  %5008 = vst [vmem:[#allocation21_spill] sm:$0xff] %v3084_v63 }
  0x78   : > { %5001 = vst [vmem:[#allocation14_spill] sm:$0xff] %v3041_v16 }
  0x7e   : > { %346 = vmax.xlane.f32.xlu2 %v345_v23  ;;  %343 = vmax.xlane.f32.xlu1 %v342_v27  ;;  %v3044_v23 = vld [vmem:[%s2794_s30 + $0x188] sm:$0xff] }
  0x7f   : > { %340 = vmax.xlane.f32.xlu0 %v339_v28  ;;  %5002 = vst [vmem:[#allocation15_spill] sm:$0xff] %v3044_v23 }
  0x86   : > { %355 = vmax.xlane.f32.xlu2 %v354_v35  ;;  %352 = vmax.xlane.f32.xlu1 %v351_v39  ;;  %v3051_v35 = vld [vmem:[%s2794_s30 + $0x180] sm:$0xff] }
  0x87   : > { %349 = vmax.xlane.f32.xlu0 %v348_v40  ;;  %5003 = vst [vmem:[#allocation16_spill] sm:$0xff] %v3051_v35  ;;  %v381_v40 = vsel %vm230_vm0, %v3041_v16, -inf  ;;  %v3070_v16 = vld [vmem:[%s2794_s30 + $0x198] sm:$0xff] }
  0x88   : > { %5006 = vst [vmem:[#allocation19_spill] sm:$0xff] %v3070_v16 }
  0x8e   : > { %364 = vmax.xlane.f32.xlu2 %v363_v47  ;;  %361 = vmax.xlane.f32.xlu1 %v360_v51  ;;  %v378_v47 = vsel %vm230_vm0, %v3044_v23, -inf  ;;  %v375_v51 = vsel %vm230_vm0, %v3051_v35, -inf }
  0x8f   : > { %358 = vmax.xlane.f32.xlu0 %v357_v52  ;;  %v3060_v52 = vld [vmem:[%s2794_s30 + $0x1a8] sm:$0xff] }
  0x90   : > { %5004 = vst [vmem:[#allocation17_spill] sm:$0xff] %v3060_v52  ;;  %v390_v35 = vsel %vm230_vm0, %v3060_v52, -inf  ;;  %v3091_v52 = vld [vmem:[%s2794_s30 + $0x1b0] sm:$0xff] }
  0x91   : > { %v3027_v58 = vpop.xlane.xlu2 %244  ;;  %v3029_v59 = vpop.xlane.xlu1 %238  ;;  %5009 = vst [vmem:[#allocation22_spill] sm:$0xff] %v3091_v52 }
  0x92   : > { %v233_v3 = vpop.xlane.xlu0 %232 }
  0x96   : > { %373 = vmax.xlane.f32.xlu2 %v372_v4  ;;  %370 = vmax.xlane.f32.xlu1 %v369_v11  ;;  %v3063_v4 = vld [vmem:[%s2794_s30 + $0x1a0] sm:$0xff] }
  0x97   : > { %367 = vmax.xlane.f32.xlu0 %v366_v15  ;;  %5005 = vst [vmem:[#allocation18_spill] sm:$0xff] %v3063_v4 }
  0x99   : > { %v3046_v27 = vpop.xlane.xlu2 %247  ;;  %v3048_v28 = vpop.xlane.xlu1 %241 }
  0x9a   : > { %v236_v39 = vpop.xlane.xlu0 %235 }
  0x9e   : > { %382 = vmax.xlane.f32.xlu2 %v381_v40  ;;  %379 = vmax.xlane.f32.xlu1 %v378_v47  ;;  %v387_v40 = vsel %vm230_vm0, %v3063_v4, -inf  ;;  %v384_v47 = vsel %vm230_vm0, %v3070_v16, -inf }
  0x9f   : > { %376 = vmax.xlane.f32.xlu0 %v375_v51  ;;  %v3081_v51 = vld [vmem:[%s2794_s30 + $0x1c0] sm:$0xff] }
  0xa0   : > { %5007 = vst [vmem:[#allocation20_spill] sm:$0xff] %v3081_v51  ;;  %v399_v16 = vsel %vm230_vm0, %v3081_v51, -inf  ;;  %v3112_v51 = vld [vmem:[%s2794_s30 + $0x1c8] sm:$0xff] }
  0xa1   : > { %v3065_v11 = vpop.xlane.xlu2 %256  ;;  %v3067_v15 = vpop.xlane.xlu1 %253  ;;  %v402_v29 = vsel %vm230_vm0, %v3112_v51, -inf }
  0xa2   : > { %v3072_v23 = vpop.xlane.xlu0 %250 }
  0xa6   : > { %391 = vmax.xlane.f32.xlu2 %v390_v35  ;;  %388 = vmax.xlane.f32.xlu1 %v387_v40  ;;  %v396_v35 = vsel %vm230_vm0, %v3084_v63, -inf  ;;  %v393_v40 = vsel %vm230_vm0, %v3091_v52, -inf  ;;  %v423_v52 = vsub.f32 %v2803_v2, %v233_v3 }
  0xa7   : > { %385 = vmax.xlane.f32.xlu0 %v384_v47  ;;  %v3102_v47 = vld [vmem:[%s2794_s30 + $0x1d8] sm:$0xff] }
  0xa8   : > { %5010 = vst [vmem:[#allocation23_spill] sm:$0xff] %v3102_v47  ;;  %v487_v34 = vmul.f32 1.442695, %v423_v52  ;;  %v426_v52 = vsub.f32 %v2815_v7, %v3048_v28  ;;  %v3158_v7 = vld [vmem:[%s2794_s30 + $0x1f8] sm:$0xff] }
  0xa9   : > { %v3086_v57 = vpop.xlane.xlu2 %265  ;;  %v3088_v53 = vpop.xlane.xlu1 %262 }
  0xaa   : > { %v3093_v4 = vpop.xlane.xlu0 %259  ;;  %2342 = vpow2.f32 %v487_v34  ;;  %v493_v34 = vmul.f32 1.442695, %v426_v52 }
  0xae   : > { %400 = vmax.xlane.f32.xlu2 %v399_v16  ;;  %397 = vmax.xlane.f32.xlu1 %v396_v35  ;;  %v408_v16 = vsel %vm230_vm0, %v3102_v47, -inf  ;;  %v405_v35 = vsel %vm230_vm0, %v3105_v46, -inf  ;;  %v3135_v47 = vld [vmem:[%s2794_s30 + $0x1e0] sm:$0xff] }
  0xaf   : > { %394 = vmax.xlane.f32.xlu0 %v393_v40  ;;  %v424_v40 = vsub.f32 %v2818_v8, %v236_v39  ;;  %v427_v8 = vsub.f32 %v2797_v0, %v3027_v58  ;;  %v414_v39 = vsel %vm230_vm0, %v3128_v5, -inf }
  0xb0   : > { %v3151_v58 = vpop.eup %2342 }
  0xb1   : > { %v3107_v45 = vpop.xlane.xlu2 %274  ;;  %v3109_v41 = vpop.xlane.xlu1 %271  ;;  %v489_v33 = vmul.f32 1.442695, %v424_v40  ;;  %v495_v0 = vmul.f32 1.442695, %v427_v8  ;;  %v420_v8 = vsel %vm230_vm0, %v3158_v7, -inf }
  0xb2   : > { %v3114_v63 = vpop.xlane.xlu0 %268 }
  0xb3   : > { %2344 = vpow2.f32 %v489_v33 }
  0xb4   : > { %2346 = vpow2.f32 %v495_v0 }
  0xb5   : > { %2348 = vpow2.f32 %v493_v34  ;;  %v433_v34 = vsub.f32 %v2845_v19, %v3088_v53 }
  0xb6   : > { %409 = vmax.xlane.f32.xlu2 %v408_v16  ;;  %406 = vmax.xlane.f32.xlu1 %v405_v35  ;;  %v411_v16 = vsel %vm230_vm0, %v3135_v47, -inf  ;;  %v425_v35 = vsub.f32 %v2800_v1, %v3029_v59  ;;  %v430_v1 = vsub.f32 %v2830_v13, %v3067_v15  ;;  %v429_v59 = vsub.f32 %v2833_v14, %v3072_v23 }
  0xb7   : > { %403 = vmax.xlane.f32.xlu0 %v402_v29  ;;  %v417_v29 = vsel %vm230_vm0, %v3125_v17, -inf  ;;  %v507_v19 = vmul.f32 1.442695, %v433_v34  ;;  %v434_v34 = vsub.f32 %v2842_v18, %v3086_v57 }
  0xb8   : > { %v491_v40 = vmul.f32 1.442695, %v425_v35  ;;  %v501_v13 = vmul.f32 1.442695, %v430_v1  ;;  %v499_v15 = vmul.f32 1.442695, %v429_v59  ;;  %v431_v1 = vsub.f32 %v2827_v12, %v3065_v11 }
  0xb9   : > { %v3130_v2 = vpop.xlane.xlu2 %283  ;;  %v3132_v3 = vpop.xlane.xlu1 %280 }
  0xba   : > { %v3137_v46 = vpop.xlane.xlu0 %277  ;;  %v3160_v33 = vpop.eup %2344  ;;  %2350 = vpow2.f32 %v491_v40  ;;  %v432_v40 = vsub.f32 %v2848_v20, %v3093_v4  ;;  %v503_v20 = vmul.f32 1.442695, %v431_v1 }
  0xbb   : > { %v618_v52 = vsel %vm230_vm0, %v3160_v33, 0.0  ;;  %2352 = vpow2.f32 %v501_v13 }
  0xbc   : > { %2354 = vpow2.f32 %v499_v15  ;;  %v505_v53 = vmul.f32 1.442695, %v432_v40  ;;  %v436_v15 = vsub.f32 %v2860_v25, %v3109_v41 }
  0xbe   : > { %418 = vmax.xlane.f32.xlu2 %v417_v29  ;;  %415 = vmax.xlane.f32.xlu1 %v414_v39  ;;  %v428_v29 = vsub.f32 %v2812_v6, %v3046_v27  ;;  %v615_v39 = vsel %vm230_vm0, %v3151_v58, 0.0  ;;  %v513_v25 = vmul.f32 1.442695, %v436_v15  ;;  %v437_v15 = vsub.f32 %v2857_v24, %v3107_v45 }
  0xbf   : > { %412 = vmax.xlane.f32.xlu0 %v411_v16  ;;  %v3176_v16 = vpop.eup %2346 }
  0xc0   : > { %v497_v14 = vmul.f32 1.442695, %v428_v29  ;;  %v3182_v0 = vpop.eup %2348 }
  0xc1   : > { %v3153_v17 = vpop.xlane.xlu2 %292  ;;  %v3155_v5 = vpop.xlane.xlu1 %289  ;;  %v624_v59 = vsel %vm230_vm0, %v3182_v0, 0.0 }
  0xc2   : > { %v3162_v28 = vpop.xlane.xlu0 %286  ;;  %v3186_v27 = vpop.eup %2350  ;;  %2356 = vpow2.f32 %v497_v14  ;;  %v435_v14 = vsub.f32 %v2863_v26, %v3114_v63  ;;  %v509_v26 = vmul.f32 1.442695, %v434_v34 }
  0xc3   : > { %v621_v29 = vsel %vm230_vm0, %v3186_v27, 0.0  ;;  %2358 = vpow2.f32 %v507_v19 }
  0xc4   : > { %2360 = vpow2.f32 %v505_v53  ;;  %v511_v41 = vmul.f32 1.442695, %v435_v14  ;;  %v439_v53 = vsub.f32 %v2875_v31, %v3132_v3 }
  0xc5   : > { %2362 = vpow2.f32 %v503_v20  ;;  %v438_v20 = vsub.f32 %v2878_v32, %v3137_v46  ;;  %v515_v32 = vmul.f32 1.442695, %v437_v15 }
  0xc6   : > { %616 = vadd.xlane.f32.xlu1 %v615_v39  ;;  %619 = vadd.xlane.f32.xlu2 %v618_v52  ;;  %v3200_v39 = vpop.eup %2352  ;;  %2364 = vpow2.f32 %v513_v25  ;;  %v519_v31 = vmul.f32 1.442695, %v439_v53  ;;  %v440_v53 = vsub.f32 %v2872_v30, %v3130_v2 }
  0xc7   : > { %421 = vmax.xlane.f32.xlu0 %v420_v8  ;;  %v627_v8 = vsel %vm230_vm0, %v3176_v16, 0.0  ;;  %v3206_v11 = vpop.eup %2354  ;;  %v636_v40 = vsel %vm230_vm0, %v3200_v39, 0.0  ;;  %2366 = vpow2.f32 %v511_v41  ;;  %v517_v3 = vmul.f32 1.442695, %v438_v20 }
  0xc8   : > { %v3210_v13 = vpop.eup %2356  ;;  %v633_v1 = vsel %vm230_vm0, %v3206_v11, 0.0  ;;  %2368 = vpow2.f32 %v509_v26  ;;  %v442_v41 = vsub.f32 %v2890_v37, %v3155_v5  ;;  %v441_v26 = vsub.f32 %v2893_v38, %v3162_v28 }
  0xc9   : > { %v3178_v23 = vpop.xlane.xlu2 %301  ;;  %v3180_v35 = vpop.xlane.xlu1 %298  ;;  %2370 = vpow2.f32 %v519_v31  ;;  %v521_v38 = vmul.f32 1.442695, %v440_v53 }
  0xca   : > { %v3184_v6 = vpop.xlane.xlu0 %295  ;;  %2372 = vpow2.f32 %v517_v3  ;;  %v525_v37 = vmul.f32 1.442695, %v442_v41  ;;  %v523_v5 = vmul.f32 1.442695, %v441_v26  ;;  %v445_v3 = vsub.f32 %v2905_v43, %v3180_v35 }
  0xcb   : > { %2374 = vpow2.f32 %v515_v32  ;;  %v444_v32 = vsub.f32 %v2908_v44, %v3184_v6  ;;  %v443_v41 = vsub.f32 %v2887_v36, %v3153_v17 }
  0xcc   : > { %2376 = vpow2.f32 %v525_v37  ;;  %v531_v43 = vmul.f32 1.442695, %v445_v3  ;;  %v446_v3 = vsub.f32 %v2902_v42, %v3178_v23 }
  0xcd   : > { %2378 = vpow2.f32 %v523_v5  ;;  %v529_v35 = vmul.f32 1.442695, %v444_v32  ;;  %v527_v44 = vmul.f32 1.442695, %v443_v41 }
  0xce   : > { %625 = vadd.xlane.f32.xlu1 %v624_v59  ;;  %628 = vadd.xlane.f32.xlu2 %v627_v8  ;;  %v630_v59 = vsel %vm230_vm0, %v3210_v13, 0.0  ;;  %v3224_v8 = vpop.eup %2358  ;;  %2380 = vpow2.f32 %v521_v38 }
  0xcf   : > { %622 = vadd.xlane.f32.xlu0 %v621_v29  ;;  %v3230_v57 = vpop.eup %2360  ;;  %v645_v14 = vsel %vm230_vm0, %v3224_v8, 0.0  ;;  %2382 = vpow2.f32 %v531_v43 }
  0xd0   : > { %v3234_v19 = vpop.eup %2362  ;;  %v642_v34 = vsel %vm230_vm0, %v3230_v57, 0.0  ;;  %2384 = vpow2.f32 %v529_v35 }
  0xd1   : > { %v3202_v4 = vpop.xlane.xlu2 %310  ;;  %v3204_v12 = vpop.xlane.xlu1 %307  ;;  %2386 = vpow2.f32 %v527_v44 }
  0xd2   : > { %v3208_v52 = vpop.xlane.xlu0 %304  ;;  %v448_v5 = vsub.f32 %v2920_v49, %v3204_v12 }
  0xd3   : > { %v447_v38 = vsub.f32 %v2923_v50, %v3208_v52  ;;  %v533_v50 = vmul.f32 1.442695, %v446_v3 }
  0xd4   : > { %v537_v49 = vmul.f32 1.442695, %v448_v5  ;;  %v449_v5 = vsub.f32 %v2917_v48, %v3202_v4 }
  0xd5   : > { %v535_v12 = vmul.f32 1.442695, %v447_v38 }
  0xd6   : > { %637 = vadd.xlane.f32.xlu2 %v636_v40  ;;  %634 = vadd.xlane.f32.xlu1 %v633_v1  ;;  %v639_v40 = vsel %vm230_vm0, %v3234_v19, 0.0  ;;  %v3248_v1 = vpop.eup %2364  ;;  %2388 = vpow2.f32 %v537_v49 }
  0xd7   : > { %631 = vadd.xlane.f32.xlu0 %v630_v59  ;;  %v3254_v45 = vpop.eup %2366  ;;  %v654_v20 = vsel %vm230_vm0, %v3248_v1, 0.0  ;;  %2390 = vpow2.f32 %v535_v12 }
  0xd8   : > { %v3258_v25 = vpop.eup %2368  ;;  %v651_v15 = vsel %vm230_vm0, %v3254_v45, 0.0  ;;  %2392 = vpow2.f32 %v533_v50 }
  0xd9   : > { %v3226_v63 = vpop.xlane.xlu2 %319  ;;  %v3228_v18 = vpop.xlane.xlu1 %316 }
  0xda   : > { %v3232_v29 = vpop.xlane.xlu0 %313  ;;  %v451_v35 = vsub.f32 %v2935_v55, %v3228_v18 }
  0xdb   : > { %v450_v44 = vsub.f32 %v2938_v56, %v3232_v29  ;;  %v539_v56 = vmul.f32 1.442695, %v449_v5 }
  0xdc   : > { %v543_v55 = vmul.f32 1.442695, %v451_v35  ;;  %v452_v35 = vsub.f32 %v2932_v54, %v3226_v63 }
  0xdd   : > { %v541_v18 = vmul.f32 1.442695, %v450_v44 }
  0xde   : > { %646 = vadd.xlane.f32.xlu2 %v645_v14  ;;  %643 = vadd.xlane.f32.xlu1 %v642_v34  ;;  %v648_v14 = vsel %vm230_vm0, %v3258_v25, 0.0  ;;  %v3272_v34 = vpop.eup %2370  ;;  %2394 = vpow2.f32 %v543_v55 }
  0xdf   : > { %640 = vadd.xlane.f32.xlu0 %v639_v40  ;;  %v3278_v2 = vpop.eup %2372  ;;  %v663_v26 = vsel %vm230_vm0, %v3272_v34, 0.0  ;;  %2396 = vpow2.f32 %v541_v18 }
  0xe0   : > { %v3282_v31 = vpop.eup %2374  ;;  %v660_v53 = vsel %vm230_vm0, %v3278_v2, 0.0  ;;  %2398 = vpow2.f32 %v539_v56 }
  0xe1   : > { %v3250_v46 = vpop.xlane.xlu2 %328  ;;  %v3252_v24 = vpop.xlane.xlu1 %325 }
  0xe2   : > { %v3256_v59 = vpop.xlane.xlu0 %322  ;;  %v454_v12 = vsub.f32 %v2950_v61, %v3252_v24 }
  0xe3   : > { %v453_v50 = vsub.f32 %v2953_v62, %v3256_v59  ;;  %v545_v62 = vmul.f32 1.442695, %v452_v35 }
  0xe4   : > { %v549_v61 = vmul.f32 1.442695, %v454_v12  ;;  %v455_v12 = vsub.f32 %v2947_v60, %v3250_v46 }
  0xe5   : > { %v547_v24 = vmul.f32 1.442695, %v453_v50 }
  0xe6   : > { %655 = vadd.xlane.f32.xlu2 %v654_v20  ;;  %652 = vadd.xlane.f32.xlu1 %v651_v15  ;;  %v657_v20 = vsel %vm230_vm0, %v3282_v31, 0.0  ;;  %v3296_v15 = vpop.eup %2376  ;;  %2400 = vpow2.f32 %v549_v61 }
  0xe7   : > { %649 = vadd.xlane.f32.xlu0 %v648_v14  ;;  %v3302_v17 = vpop.eup %2378  ;;  %v672_v32 = vsel %vm230_vm0, %v3296_v15, 0.0  ;;  %2402 = vpow2.f32 %v547_v24 }
  0xe8   : > { %v3306_v37 = vpop.eup %2380  ;;  %v669_v41 = vsel %vm230_vm0, %v3302_v17, 0.0  ;;  %2404 = vpow2.f32 %v545_v62 }
  0xe9   : > { %v3274_v28 = vpop.xlane.xlu2 %337  ;;  %v3276_v30 = vpop.xlane.xlu1 %334 }
  0xea   : > { %v3280_v40 = vpop.xlane.xlu0 %331  ;;  %v457_v18 = vsub.f32 %v2965_v9, %v3276_v30 }
  0xeb   : > { %v456_v56 = vsub.f32 %v2968_v10, %v3280_v40  ;;  %v551_v10 = vmul.f32 1.442695, %v455_v12 }
  0xec   : > { %v555_v9 = vmul.f32 1.442695, %v457_v18  ;;  %v5023_v18 = vld [vmem:[#allocation3_spill] sm:$0xff] }
  0xed   : > { %v553_v30 = vmul.f32 1.442695, %v456_v56  ;;  %v458_v56 = vsub.f32 %v5023_v18, %v3274_v28 }
  0xee   : > { %664 = vadd.xlane.f32.xlu2 %v663_v26  ;;  %661 = vadd.xlane.f32.xlu1 %v660_v53  ;;  %v666_v26 = vsel %vm230_vm0, %v3306_v37, 0.0  ;;  %v3320_v53 = vpop.eup %2382  ;;  %2406 = vpow2.f32 %v555_v9 }
  0xef   : > { %658 = vadd.xlane.f32.xlu0 %v657_v20  ;;  %v3326_v23 = vpop.eup %2384  ;;  %v681_v38 = vsel %vm230_vm0, %v3320_v53, 0.0  ;;  %2408 = vpow2.f32 %v553_v30  ;;  %v5026_v30 = vld [vmem:[#allocation4_spill] sm:$0xff] }
  0xf0   : > { %v3330_v43 = vpop.eup %2386  ;;  %v678_v3 = vsel %vm230_vm0, %v3326_v23, 0.0  ;;  %2410 = vpow2.f32 %v551_v10 }
  0xf1   : > { %v3298_v6 = vpop.xlane.xlu2 %346  ;;  %v3300_v36 = vpop.xlane.xlu1 %343 }
  0xf2   : > { %v3304_v14 = vpop.xlane.xlu0 %340  ;;  %v460_v24 = vsub.f32 %v2980_v21, %v3300_v36  ;;  %v461_v10 = vsub.f32 %v5026_v30, %v3298_v6 }
  0xf3   : > { %v459_v62 = vsub.f32 %v2983_v22, %v3304_v14  ;;  %v557_v22 = vmul.f32 1.442695, %v458_v56  ;;  %v5029_v56 = vld [vmem:[#allocation7_spill] sm:$0xff] }
  0xf4   : > { %v561_v21 = vmul.f32 1.442695, %v460_v24  ;;  %v5028_v24 = vld [vmem:[#allocation6_spill] sm:$0xff]  ;;  %v563_v6 = vmul.f32 1.442695, %v461_v10 }
  0xf5   : > { %v559_v36 = vmul.f32 1.442695, %v459_v62 }
  0xf6   : > { %673 = vadd.xlane.f32.xlu2 %v672_v32  ;;  %670 = vadd.xlane.f32.xlu1 %v669_v41  ;;  %v675_v32 = vsel %vm230_vm0, %v3330_v43, 0.0  ;;  %v3344_v41 = vpop.eup %2388  ;;  %2412 = vpow2.f32 %v561_v21  ;;  %v5030_v21 = vld [vmem:[#allocation5_spill] sm:$0xff] }
  0xf7   : > { %667 = vadd.xlane.f32.xlu0 %v666_v26  ;;  %5014 = vst [vmem:[#allocation27_spill] sm:$0xff] %v3344_v41  ;;  %v3350_v4 = vpop.eup %2390  ;;  %v690_v44 = vsel %vm230_vm0, %v3344_v41, 0.0  ;;  %2414 = vpow2.f32 %v559_v36 }
  0xf8   : > { %5015 = vst [vmem:[#allocation28_spill] sm:$0xff] %v3350_v4  ;;  %v3354_v49 = vpop.eup %2392  ;;  %v687_v5 = vsel %vm230_vm0, %v3350_v4, 0.0  ;;  %2416 = vpow2.f32 %v557_v22 }
  0xf9   : > { %v3322_v52 = vpop.xlane.xlu2 %355  ;;  %v3324_v42 = vpop.xlane.xlu1 %352  ;;  %5016 = vst [vmem:[#allocation29_spill] sm:$0xff] %v3354_v49  ;;  %2418 = vpow2.f32 %v563_v6  ;;  %v5039_v6 = vld [vmem:[#allocation13_spill] sm:$0xff] }
  0xfa   : > { %v3328_v20 = vpop.xlane.xlu0 %349  ;;  %v463_v62 = vsub.f32 %v5028_v24, %v3324_v42  ;;  %v464_v42 = vsub.f32 %v5030_v21, %v3322_v52  ;;  %v5035_v52 = vld [vmem:[#allocation10_spill] sm:$0xff] }
  0xfc   : > { %v567_v36 = vmul.f32 1.442695, %v463_v62 }
  0xfe   : > { %682 = vadd.xlane.f32.xlu2 %v681_v38  ;;  %679 = vadd.xlane.f32.xlu1 %v678_v3  ;;  %v684_v38 = vsel %vm230_vm0, %v3354_v49, 0.0  ;;  %v3368_v3 = vpop.eup %2394  ;;  %2420 = vpow2.f32 %v567_v36  ;;  %v5040_v36 = vld [vmem:[#allocation14_spill] sm:$0xff] }
  0xff   : > { %676 = vadd.xlane.f32.xlu0 %v675_v32  ;;  %5017 = vst [vmem:[#allocation30_spill] sm:$0xff] %v3368_v3  ;;  %v3374_v63 = vpop.eup %2396  ;;  %v699_v50 = vsel %vm230_vm0, %v3368_v3, 0.0 }
 0x100   : > { %5018 = vst [vmem:[#allocation31_spill] sm:$0xff] %v3374_v63  ;;  %v3378_v55 = vpop.eup %2398  ;;  %v696_v35 = vsel %vm230_vm0, %v3374_v63, 0.0 }
 0x101   : > { %v3346_v29 = vpop.xlane.xlu2 %364  ;;  %v3348_v48 = vpop.xlane.xlu1 %361  ;;  %5019 = vst [vmem:[#allocation32_spill] sm:$0xff] %v3378_v55 }
 0x102   : > { %v3352_v26 = vpop.xlane.xlu0 %358 }
 0x103   : > { %v465_v62 = vsub.f32 %v5035_v52, %v3352_v26 }
 0x106   : > { %691 = vadd.xlane.f32.xlu2 %v690_v44  ;;  %688 = vadd.xlane.f32.xlu1 %v687_v5  ;;  %v693_v44 = vsel %vm230_vm0, %v3378_v55, 0.0  ;;  %v3392_v5 = vpop.eup %2400 }
 0x107   : > { %685 = vadd.xlane.f32.xlu0 %v684_v38  ;;  %5020 = vst [vmem:[#allocation33_spill] sm:$0xff] %v3392_v5  ;;  %v3398_v46 = vpop.eup %2402  ;;  %v708_v12 = vsel %vm230_vm0, %v3392_v5, 0.0 }
 0x108   : > { %5021 = vst [vmem:[#allocation34_spill] sm:$0xff] %v3398_v46  ;;  %v3402_v61 = vpop.eup %2404 }
 0x109   : > { %v3370_v59 = vpop.xlane.xlu2 %373  ;;  %v3372_v54 = vpop.xlane.xlu1 %370  ;;  %5022 = vst [vmem:[#allocation35_spill] sm:$0xff] %v3402_v61 }
 0x10a   : > { %v3376_v32 = vpop.xlane.xlu0 %367 }
 0x10b   : > { %v468_v5 = vsub.f32 %v5039_v6, %v3376_v32  ;;  %v5045_v6 = vld [vmem:[#allocation17_spill] sm:$0xff] }
 0x10e   : > { %700 = vadd.xlane.f32.xlu2 %v699_v50  ;;  %697 = vadd.xlane.f32.xlu1 %v696_v35  ;;  %v705_v50 = vsel %vm230_vm0, %v3398_v46, 0.0  ;;  %v702_v35 = vsel %vm230_vm0, %v3402_v61, 0.0 }
 0x10f   : > { %694 = vadd.xlane.f32.xlu0 %v693_v44  ;;  %v3416_v44 = vpop.eup %2406 }
 0x110   : > { %5024 = vst [vmem:[#allocation3_spill] sm:$0xff] %v3416_v44  ;;  %v3422_v9 = vpop.eup %2408 }
 0x111   : > { %v3394_v40 = vpop.xlane.xlu2 %382  ;;  %v3396_v60 = vpop.xlane.xlu1 %379  ;;  %5025 = vst [vmem:[#allocation36_spill] sm:$0xff] %v3422_v9 }
 0x112   : > { %v3400_v38 = vpop.xlane.xlu0 %376  ;;  %v3428_v61 = vpop.eup %2410  ;;  %v473_v55 = vsub.f32 %v5040_v36, %v3394_v40  ;;  %v577_v40 = vmul.f32 1.442695, %v468_v5  ;;  %v5047_v36 = vld [vmem:[#allocation18_spill] sm:$0xff] }
 0x113   : > { %5027 = vst [vmem:[#allocation4_spill] sm:$0xff] %v3428_v61  ;;  %v711_v30 = vsel %vm230_vm0, %v3428_v61, 0.0 }
 0x116   : > { %709 = vadd.xlane.f32.xlu2 %v708_v12  ;;  %706 = vadd.xlane.f32.xlu1 %v705_v50  ;;  %v462_v12 = vsub.f32 %v5029_v56, %v3328_v20  ;;  %v717_v50 = vsel %vm230_vm0, %v3416_v44, 0.0  ;;  %v5031_v20 = vld [vmem:[#allocation8_spill] sm:$0xff]  ;;  %v3444_v56 = vpop.eup %2412  ;;  %v5033_v44 = vld [vmem:[#allocation9_spill] sm:$0xff] }
 0x117   : > { %703 = vadd.xlane.f32.xlu0 %v702_v35  ;;  %v714_v35 = vsel %vm230_vm0, %v3422_v9, 0.0  ;;  %v467_v22 = vsub.f32 %v5031_v20, %v3346_v29  ;;  %5032 = vst [vmem:[#allocation6_spill] sm:$0xff] %v3444_v56  ;;  %v466_v9 = vsub.f32 %v5033_v44, %v3348_v48  ;;  %v569_v29 = vmul.f32 1.442695, %v464_v42  ;;  %v5038_v44 = vld [vmem:[#allocation12_spill] sm:$0xff] }
 0x118   : > { %v565_v24 = vmul.f32 1.442695, %v462_v12  ;;  %v469_v20 = vsub.f32 %v5038_v44, %v3372_v54  ;;  %v726_v26 = vsel %vm230_vm0, %v3444_v56, 0.0  ;;  %v571_v42 = vmul.f32 1.442695, %v465_v62  ;;  %v5043_v62 = vld [vmem:[#allocation16_spill] sm:$0xff] }
 0x119   : > { %v3418_v14 = vpop.xlane.xlu2 %391  ;;  %v3420_v28 = vpop.xlane.xlu1 %388  ;;  %v575_v48 = vmul.f32 1.442695, %v467_v22  ;;  %v573_v61 = vmul.f32 1.442695, %v466_v9  ;;  %v5041_v9 = vld [vmem:[#allocation15_spill] sm:$0xff] }
 0x11a   : > { %v3426_v18 = vpop.xlane.xlu0 %385  ;;  %2422 = vpow2.f32 %v565_v24  ;;  %v472_v32 = vsub.f32 %v5041_v9, %v3396_v60  ;;  %v579_v22 = vmul.f32 1.442695, %v469_v20  ;;  %v587_v60 = vmul.f32 1.442695, %v473_v55 }
 0x11b   : > { %2424 = vpow2.f32 %v569_v29 }
 0x11c   : > { %2426 = vpow2.f32 %v575_v48  ;;  %v475_v48 = vsub.f32 %v5047_v36, %v3420_v28  ;;  %v5051_v28 = vld [vmem:[#allocation21_spill] sm:$0xff] }
 0x11d   : > { %2428 = vpow2.f32 %v573_v61  ;;  %v5049_v61 = vld [vmem:[#allocation20_spill] sm:$0xff] }
 0x11e   : > { %718 = vadd.xlane.f32.xlu2 %v717_v50  ;;  %715 = vadd.xlane.f32.xlu1 %v714_v35  ;;  %v3452_v50 = vpop.eup %2414  ;;  %2430 = vpow2.f32 %v571_v42 }
 0x11f   : > { %712 = vadd.xlane.f32.xlu0 %v711_v30  ;;  %5034 = vst [vmem:[#allocation7_spill] sm:$0xff] %v3452_v50  ;;  %v3458_v12 = vpop.eup %2416  ;;  %v5037_v30 = vld [vmem:[#allocation11_spill] sm:$0xff]  ;;  %v723_v52 = vsel %vm230_vm0, %v3452_v50, 0.0 }
 0x120   : > { %5036 = vst [vmem:[#allocation5_spill] sm:$0xff] %v3458_v12  ;;  %v470_v21 = vsub.f32 %v5037_v30, %v3370_v59  ;;  %v720_v59 = vsel %vm230_vm0, %v3458_v12, 0.0  ;;  %v3476_v24 = vpop.eup %2418  ;;  %v471_v30 = vsub.f32 %v5043_v62, %v3400_v38  ;;  %v5048_v38 = vld [vmem:[#allocation19_spill] sm:$0xff] }
 0x121   : > { %v3448_v10 = vpop.xlane.xlu2 %400  ;;  %v3450_v46 = vpop.xlane.xlu1 %397  ;;  %5042 = vst [vmem:[#allocation8_spill] sm:$0xff] %v3476_v24  ;;  %v474_v9 = vsub.f32 %v5048_v38, %v3426_v18  ;;  %v591_v18 = vmul.f32 1.442695, %v475_v48  ;;  %v5057_v48 = vld [vmem:[#allocation24_spill] sm:$0xff] }
 0x122   : > { %v3456_v35 = vpop.xlane.xlu0 %394  ;;  %v581_v54 = vmul.f32 1.442695, %v470_v21  ;;  %v3480_v44 = vpop.eup %2420  ;;  %v583_v5 = vmul.f32 1.442695, %v471_v30  ;;  %v478_v42 = vsub.f32 %v5051_v28, %v3450_v46  ;;  %v729_v30 = vsel %vm230_vm0, %v3476_v24, 0.0  ;;  %v5055_v46 = vld [vmem:[#allocation23_spill] sm:$0xff] }
 0x123   : > { %5044 = vst [vmem:[#allocation9_spill] sm:$0xff] %v3480_v44  ;;  %v735_v62 = vsel %vm230_vm0, %v3480_v44, 0.0 }
 0x124   : > { %2432 = vpow2.f32 %v581_v54 }
 0x125   : > { %2434 = vpow2.f32 %v579_v22  ;;  %v5053_v22 = vld [vmem:[#allocation22_spill] sm:$0xff] }
 0x126   : > { %727 = vadd.xlane.f32.xlu2 %v726_v26  ;;  %724 = vadd.xlane.f32.xlu1 %v723_v52  ;;  %v476_v26 = vsub.f32 %v5045_v6, %v3418_v14  ;;  %v3484_v52 = vpop.eup %2422  ;;  %v479_v14 = vsub.f32 %v5049_v61, %v3448_v10  ;;  %2436 = vpow2.f32 %v577_v40  ;;  %v477_v10 = vsub.f32 %v5053_v22, %v3456_v35 }
 0x127   : > { %721 = vadd.xlane.f32.xlu0 %v720_v59  ;;  %5046 = vst [vmem:[#allocation10_spill] sm:$0xff] %v3484_v52  ;;  %v585_v59 = vmul.f32 1.442695, %v472_v32  ;;  %v3494_v6 = vpop.eup %2424  ;;  %v732_v54 = vsel %vm230_vm0, %v3484_v52, 0.0  ;;  %2438 = vpow2.f32 %v587_v60  ;;  %v597_v35 = vmul.f32 1.442695, %v478_v42 }
 0x128   : > { %5050 = vst [vmem:[#allocation11_spill] sm:$0xff] %v3494_v6  ;;  %v593_v55 = vmul.f32 1.442695, %v476_v26  ;;  %v3500_v32 = vpop.eup %2426  ;;  %v589_v26 = vmul.f32 1.442695, %v474_v9 }
 0x129   : > { %v410_v29 = vpop.xlane.xlu2 %409  ;;  %v407_v21 = vpop.xlane.xlu1 %406  ;;  %5052 = vst [vmem:[#allocation12_spill] sm:$0xff] %v3500_v32  ;;  %2440 = vpow2.f32 %v585_v59  ;;  %v599_v60 = vmul.f32 1.442695, %v479_v14  ;;  %v595_v59 = vmul.f32 1.442695, %v477_v10 }
 0x12a   : > { %v404_v20 = vpop.xlane.xlu0 %403  ;;  %v3506_v40 = vpop.eup %2428  ;;  %v482_v36 = vsub.f32 %v5055_v46, %v410_v29  ;;  %2442 = vpow2.f32 %v583_v5  ;;  %v481_v61 = vsub.f32 %v5057_v48, %v407_v21 }
 0x12b   : > { %5054 = vst [vmem:[#allocation13_spill] sm:$0xff] %v3506_v40  ;;  %v3509_v38 = vpop.eup %2430  ;;  %2444 = vpow2.f32 %v593_v55 }
 0x12c   : > { %5056 = vst [vmem:[#allocation14_spill] sm:$0xff] %v3509_v38  ;;  %v3512_v28 = vpop.eup %2432  ;;  %2446 = vpow2.f32 %v591_v18  ;;  %v605_v5 = vmul.f32 1.442695, %v482_v36  ;;  %v603_v21 = vmul.f32 1.442695, %v481_v61  ;;  %v5064_v18 = vld [vmem:[#allocation26_spill] sm:$0xff] }
 0x12d   : > { %5058 = vst [vmem:[#allocation15_spill] sm:$0xff] %v3512_v28  ;;  %v3515_v24 = vpop.eup %2434  ;;  %2448 = vpow2.f32 %v589_v26  ;;  %v741_v46 = vsel %vm230_vm0, %v3509_v38, 0.0 }
 0x12e   : > { %736 = vadd.xlane.f32.xlu2 %v735_v62  ;;  %733 = vadd.xlane.f32.xlu1 %v732_v54  ;;  %v480_v62 = vsub.f32 %v3112_v51, %v404_v20  ;;  %5059 = vst [vmem:[#allocation16_spill] sm:$0xff] %v3515_v24  ;;  %v3517_v9 = vpop.eup %2436  ;;  %2450 = vpow2.f32 %v599_v60  ;;  %v744_v51 = vsel %vm230_vm0, %v3506_v40, 0.0  ;;  %v738_v60 = vsel %vm230_vm0, %v3494_v6, 0.0 }
 0x12f   : > { %730 = vadd.xlane.f32.xlu0 %v729_v30  ;;  %5060 = vst [vmem:[#allocation17_spill] sm:$0xff] %v3517_v9  ;;  %v3519_v14 = vpop.eup %2438  ;;  %v5062_v30 = vld [vmem:[#allocation25_spill] sm:$0xff]  ;;  %2452 = vpow2.f32 %v597_v35 }
 0x130   : > { %5061 = vst [vmem:[#allocation18_spill] sm:$0xff] %v3519_v14  ;;  %v3524_v20 = vpop.eup %2440  ;;  %v601_v42 = vmul.f32 1.442695, %v480_v62  ;;  %2454 = vpow2.f32 %v595_v59 }
 0x131   : > { %v419_v54 = vpop.xlane.xlu2 %418  ;;  %v416_v22 = vpop.xlane.xlu1 %415  ;;  %5063 = vst [vmem:[#allocation19_spill] sm:$0xff] %v3524_v20  ;;  %2456 = vpow2.f32 %v605_v5 }
 0x132   : > { %v413_v29 = vpop.xlane.xlu0 %412  ;;  %v485_v55 = vsub.f32 %v5062_v30, %v419_v54  ;;  %v484_v10 = vsub.f32 %v5064_v18, %v416_v22  ;;  %v3529_v26 = vpop.eup %2442  ;;  %2458 = vpow2.f32 %v603_v21 }
 0x133   : > { %5065 = vst [vmem:[#allocation20_spill] sm:$0xff] %v3529_v26  ;;  %v483_v36 = vsub.f32 %v3135_v47, %v413_v29  ;;  %v3534_v48 = vpop.eup %2444  ;;  %2460 = vpow2.f32 %v601_v42  ;;  %v756_v42 = vsel %vm230_vm0, %v3512_v28, 0.0 }
 0x134   : > { %5066 = vst [vmem:[#allocation21_spill] sm:$0xff] %v3534_v48  ;;  %v3536_v61 = vpop.eup %2446  ;;  %v611_v35 = vmul.f32 1.442695, %v485_v55  ;;  %v609_v54 = vmul.f32 1.442695, %v484_v10  ;;  %v747_v55 = vsel %vm230_vm0, %v3500_v32, 0.0 }
 0x135   : > { %5067 = vst [vmem:[#allocation22_spill] sm:$0xff] %v3536_v61  ;;  %v3538_v62 = vpop.eup %2448  ;;  %v607_v29 = vmul.f32 1.442695, %v483_v36  ;;  %v750_v10 = vsel %vm230_vm0, %v3517_v9, 0.0  ;;  %v3566_v36 = vsel %vm230_vm0, %v3519_v14, 0.0  ;;  %v3578_v28 = vsel %vm230_vm0, %v3534_v48, 0.0 }
 0x136   : > { %745 = vadd.xlane.f32.xlu2 %v744_v51  ;;  %742 = vadd.xlane.f32.xlu1 %v741_v46  ;;  %5068 = vst [vmem:[#allocation23_spill] sm:$0xff] %v3538_v62  ;;  %v3544_v59 = vpop.eup %2450  ;;  %v753_v51 = vsel %vm230_vm0, %v3515_v24, 0.0  ;;  %v762_v46 = vsel %vm230_vm0, %v3524_v20, 0.0 }
 0x137   : > { %739 = vadd.xlane.f32.xlu0 %v738_v60  ;;  %5069 = vst [vmem:[#allocation24_spill] sm:$0xff] %v3544_v59  ;;  %v3547_v5 = vpop.eup %2452 }
 0x138   : > { %5070 = vst [vmem:[#allocation25_spill] sm:$0xff] %v3547_v5  ;;  %v3550_v21 = vpop.eup %2454 }
 0x139   : > { %v3540_v22 = vpop.xlane.xlu1 %616  ;;  %v3542_v47 = vpop.xlane.xlu2 %619  ;;  %5071 = vst [vmem:[#allocation26_spill] sm:$0xff] %v3550_v21 }
 0x13a   : > { %2462 = vrcp.f32 %v3540_v22  ;;  %v422_v30 = vpop.xlane.xlu0 %421  ;;  %v3558_v18 = vpop.eup %2456  ;;  %v816_v14 = vand.u32 2147483647, %v3540_v22  ;;  %v818_v48 = vand.u32 2147483648, %v3540_v22  ;;  %vm812_vm1 = vweird.f32 %v3540_v22 }
 0x13b   : > { %2464 = vrcp.f32 %v3542_v47  ;;  %5072 = vst [vmem:[#allocation37_spill] sm:$0xff] %v3558_v18  ;;  %v3568_v60 = vpop.eup %2458  ;;  %v486_v32 = vsub.f32 %v3158_v7, %v422_v30  ;;  %v3614_v7 = vsel %vm230_vm0, %v3558_v18, 0.0  ;;  %vm827_vm3 = vweird.f32 %v3542_v47 }
 0x13c   : > { %2466 = vpow2.f32 %v611_v35  ;;  %5073 = vst [vmem:[#allocation38_spill] sm:$0xff] %v3568_v60  ;;  %v759_v35 = vsel %vm230_vm0, %v3529_v26, 0.0  ;;  %v3580_v20 = vpop.eup %2460  ;;  %v831_v26 = vand.u32 2147483647, %v3542_v47  ;;  %v3610_v6 = vsel %vm230_vm0, %v3568_v60, 0.0 }
 0x13d   : > { %2468 = vpow2.f32 %v609_v54  ;;  %v3574_v54 = vsel %vm230_vm0, %v3536_v61, 0.0  ;;  %5074 = vst [vmem:[#allocation39_spill] sm:$0xff] %v3580_v20  ;;  %v3625_v40 = vsel %vm230_vm0, %v3580_v20, 0.0  ;;  %vm3629_vm2 = vcmp.eq.f32.partialorder %v816_v14, 8.507059e+37 }
 0x13e   : > { %2470 = vpow2.f32 %v607_v29  ;;  %754 = vadd.xlane.f32.xlu2 %v753_v51  ;;  %751 = vadd.xlane.f32.xlu1 %v750_v10  ;;  %v3585_v29 = vsel %vm230_vm0, %v3538_v62, 0.0  ;;  %v3589_v51 = vsel %vm230_vm0, %v3547_v5, 0.0  ;;  %v3593_v10 = vsel %vm230_vm0, %v3544_v59, 0.0 }
 0x13f   : > { %748 = vadd.xlane.f32.xlu0 %v747_v55  ;;  %v3600_v55 = vsel %vm230_vm0, %v3550_v21, 0.0  ;;  %v833_v5 = vand.u32 2147483648, %v3542_v47  ;;  %v819_v12 = vor.u32 1.1754944e-38, %v818_v48  ;;  %vm3638_vm4 = vcmp.eq.f32.partialorder %v831_v26, 8.507059e+37 }
 0x140   : > { %v2463_v61 = vpop.eup %2462  ;;  %v613_v20 = vmul.f32 1.442695, %v486_v32 }
 0x141   : > { %v2465_v62 = vpop.eup %2464  ;;  %v808_v9 = vmul.f32 %v2463_v61, %v3540_v22  ;;  %v3604_v24 = vpop.xlane.xlu1 %625  ;;  %vm813_vm5 = vweird.f32 %v2463_v61 }
 0x142   : > { %v3606_v59 = vpop.xlane.xlu2 %628  ;;  %v3616_v30 = vpop.eup %2466  ;;  %v823_v21 = vmul.f32 %v2465_v62, %v3542_v47  ;;  %2472 = vrcp.f32 %v3604_v24  ;;  %vm828_vm6 = vweird.f32 %v2465_v62  ;;  %v861_v3 = vand.u32 2147483647, %v3604_v24  ;;  %vm814_vm7 = vmor %vm812_vm1, %vm813_vm5 }
 0x143   : > { %5075 = vst [vmem:[#allocation40_spill] sm:$0xff] %v3616_v30  ;;  %v3621_v38 = vpop.xlane.xlu0 %622  ;;  %v3627_v60 = vpop.eup %2468  ;;  %v809_v52 = vsub.f32 1.0, %v808_v9  ;;  %2474 = vrcp.f32 %v3606_v59  ;;  %v834_v9 = vor.u32 1.1754944e-38, %v833_v5  ;;  %v3646_v48 = vsel %vm230_vm0, %v3616_v30, 0.0  ;;  %vm829_vm10 = vmor %vm827_vm3, %vm828_vm6 }
 0x144   : > { %5076 = vst [vmem:[#allocation41_spill] sm:$0xff] %v3627_v60  ;;  %v3635_v44 = vpop.eup %2470  ;;  %v824_v50 = vsub.f32 1.0, %v823_v21  ;;  %2476 = vrcp.f32 %v3621_v38  ;;  %v863_v32 = vand.u32 2147483648, %v3604_v24  ;;  %vm857_vm8 = vweird.f32 %v3604_v24 }
 0x145   : > { %5079 = vst [vmem:[#allocation42_spill] sm:$0xff] %v3635_v44  ;;  %v810_v63 = vmul.f32 %v2463_v61, %v809_v52  ;;  %v3653_v52 = vsel %vm230_vm0, %v3627_v60, 0.0  ;;  %2478 = vpow2.f32 %v613_v20  ;;  %vm872_vm9 = vweird.f32 %v3606_v59 }
 0x146   : > { %v825_v14 = vmul.f32 %v2465_v62, %v824_v50  ;;  %763 = vadd.xlane.f32.xlu2 %v762_v46  ;;  %760 = vadd.xlane.f32.xlu1 %v759_v35  ;;  %v3657_v50 = vsel %vm230_vm0, %v3635_v44, 0.0  ;;  %v876_v35 = vand.u32 2147483647, %v3606_v59  ;;  %v878_v30 = vand.u32 2147483648, %v3606_v59 }
 0x147   : > { %v811_v26 = vadd.f32 %v2463_v61, %v810_v63  ;;  %757 = vadd.xlane.f32.xlu0 %v756_v42  ;;  %vm3674_vm11 = vcmp.eq.f32.partialorder %v861_v3, 8.507059e+37  ;;  %v864_v4 = vor.u32 1.1754944e-38, %v863_v32  ;;  %v848_v56 = vand.u32 2147483648, %v3621_v38 }
 0x148   : > { %v2473_v5 = vpop.eup %2472  ;;  %v826_v21 = vadd.f32 %v2465_v62, %v825_v14  ;;  %vm3703_vm14 = vcmp.eq.f32.partialorder %v876_v35, 8.507059e+37  ;;  %vm842_vm15 = vweird.f32 %v3621_v38 }
 0x149   : > { %v2475_v63 = vpop.eup %2474  ;;  %v815_v42 = vsel %vm814_vm7, %v2463_v61, %v811_v26  ;;  %v853_v46 = vmul.f32 %v2473_v5, %v3604_v24  ;;  %v3682_v41 = vpop.xlane.xlu1 %634  ;;  %vm858_vm12 = vweird.f32 %v2473_v5 }
 0x14a   : > { %v3670_v22 = vpop.xlane.xlu2 %637  ;;  %v820_v20 = vsel %vm3629_vm2, %v819_v12, %v815_v42  ;;  %v830_v14 = vsel %vm829_vm10, %v2465_v62, %v826_v21  ;;  %v868_v61 = vmul.f32 %v2475_v63, %v3606_v59  ;;  %v2477_v47 = vpop.eup %2476  ;;  %v846_v62 = vand.u32 2147483647, %v3621_v38  ;;  %vm859_vm1 = vmor %vm857_vm8, %vm858_vm12 }
 0x14b   : > { %v821_v26 = vmul.f32 %v3151_v58, %v820_v20  ;;  %v835_v60 = vsel %vm3638_vm4, %v834_v9, %v830_v14  ;;  %v854_v49 = vsub.f32 1.0, %v853_v46  ;;  %v838_v3 = vmul.f32 %v2477_v47, %v3621_v38  ;;  %v3694_v9 = vpop.eup %2478  ;;  %v3699_v32 = vpop.xlane.xlu0 %631 }
 0x14c   : > { %v836_v18 = vmul.f32 %v3160_v33, %v835_v60  ;;  %v869_v12 = vsub.f32 1.0, %v868_v61  ;;  %2480 = vrcp.f32 %v3670_v22  ;;  %vm873_vm13 = vweird.f32 %v2475_v63 }
 0x14d   : > { %1767 = vst.msk [vmem:[%s3688_s4] sm:$0xff] %vm230_vm0, %v821_v26  ;;  %v855_v58 = vmul.f32 %v2473_v5, %v854_v49  ;;  %v839_v60 = vsub.f32 1.0, %v838_v3  ;;  %2482 = vrcp.f32 %v3682_v41  ;;  %v879_v42 = vor.u32 1.1754944e-38, %v878_v30  ;;  %vm874_vm3 = vmor %vm872_vm9, %vm873_vm13 }
 0x14e   : > { %1768 = vst.msk [vmem:[%s3688_s4 + $0x8] sm:$0xff] %vm230_vm0, %v836_v18  ;;  %v870_v33 = vmul.f32 %v2475_v63, %v869_v12  ;;  %772 = vadd.xlane.f32.xlu2 %v3574_v54  ;;  %769 = vadd.xlane.f32.xlu1 %v3585_v29  ;;  %vm843_vm2 = vweird.f32 %v2477_v47  ;;  %v921_v54 = vand.u32 2147483647, %v3670_v22  ;;  %vm3716_vm4 = vcmp.eq.f32.partialorder %v846_v62, 8.507059e+37 }
 0x14f   : > { %v856_v49 = vadd.f32 %v2473_v5, %v855_v58  ;;  %766 = vadd.xlane.f32.xlu0 %v3566_v36  ;;  %v840_v20 = vmul.f32 %v2477_v47, %v839_v60  ;;  %2484 = vrcp.f32 %v3699_v32  ;;  %v3723_v24 = vsel %vm230_vm0, %v3694_v9, 0.0  ;;  %vm844_vm5 = vmor %vm842_vm15, %vm843_vm2 }
 0x150   : > { %v871_v46 = vadd.f32 %v2475_v63, %v870_v33  ;;  %v849_v14 = vor.u32 1.1754944e-38, %v848_v56  ;;  %vm917_vm6 = vweird.f32 %v3670_v22  ;;  %v923_v18 = vand.u32 2147483648, %v3670_v22 }
 0x151   : > { %v860_v29 = vsel %vm859_vm1, %v2473_v5, %v856_v49  ;;  %v841_v5 = vadd.f32 %v2477_v47, %v840_v20  ;;  %vm3738_vm7 = vcmp.eq.f32.partialorder %v921_v54, 8.507059e+37  ;;  %vm902_vm8 = vweird.f32 %v3682_v41 }
 0x152   : > { %v865_v36 = vsel %vm3674_vm11, %v864_v4, %v860_v29  ;;  %v875_v35 = vsel %vm874_vm3, %v2475_v63, %v871_v46  ;;  %v2481_v61 = vpop.eup %2480  ;;  %v3734_v44 = vpop.xlane.xlu2 %646  ;;  %v906_v58 = vand.u32 2147483647, %v3682_v41  ;;  %v908_v33 = vand.u32 2147483648, %v3682_v41 }
 0x153   : > { %v866_v59 = vmul.f32 %v3182_v0, %v865_v36  ;;  %v880_v26 = vsel %vm3703_vm14, %v879_v42, %v875_v35  ;;  %v2483_v4 = vpop.eup %2482  ;;  %v845_v12 = vsel %vm844_vm5, %v2477_v47, %v841_v5  ;;  %v913_v3 = vmul.f32 %v2481_v61, %v3670_v22 }
 0x154   : > { %v881_v63 = vmul.f32 %v3176_v16, %v880_v26  ;;  %v850_v38 = vsel %vm3716_vm4, %v849_v14, %v845_v12  ;;  %v898_v62 = vmul.f32 %v2483_v4, %v3682_v41  ;;  %v3749_v16 = vpop.xlane.xlu1 %643  ;;  %2486 = vrcp.f32 %v3734_v44 }
 0x155   : > { %1770 = vst.msk [vmem:[%s3688_s4 + $0x18] sm:$0xff] %vm230_vm0, %v866_v59  ;;  %v851_v47 = vmul.f32 %v3186_v27, %v850_v38  ;;  %v914_v56 = vsub.f32 1.0, %v913_v3  ;;  %v2485_v60 = vpop.eup %2484  ;;  %v924_v49 = vor.u32 1.1754944e-38, %v923_v18  ;;  %v891_v42 = vand.u32 2147483647, %v3699_v32 }
 0x156   : > { %1771 = vst.msk [vmem:[%s3688_s4 + $0x20] sm:$0xff] %vm230_vm0, %v881_v63  ;;  %781 = vadd.xlane.f32.xlu2 %v3589_v51  ;;  %778 = vadd.xlane.f32.xlu1 %v3600_v55  ;;  %v899_v21 = vsub.f32 1.0, %v898_v62  ;;  %v893_v46 = vand.u32 2147483648, %v3699_v32  ;;  %vm918_vm9 = vweird.f32 %v2481_v61  ;;  %v883_v20 = vmul.f32 %v2485_v60, %v3699_v32  ;;  %v3765_v51 = vpop.xlane.xlu0 %640 }
 0x157   : > { %775 = vadd.xlane.f32.xlu0 %v3578_v28  ;;  %1769 = vst.msk [vmem:[%s3688_s4 + $0x10] sm:$0xff] %vm230_vm0, %v851_v47  ;;  %v915_v27 = vmul.f32 %v2481_v61, %v914_v56  ;;  %2488 = vrcp.f32 %v3749_v16  ;;  %vm903_vm10 = vweird.f32 %v2483_v4  ;;  %vm3767_vm11 = vcmp.eq.f32.partialorder %v906_v58, 8.507059e+37  ;;  %vm919_vm13 = vmor %vm917_vm6, %vm918_vm9 }
 0x158   : > { %v900_v55 = vmul.f32 %v2483_v4, %v899_v21  ;;  %vm887_vm12 = vweird.f32 %v3699_v32  ;;  %v909_v28 = vor.u32 1.1754944e-38, %v908_v33  ;;  %v884_v30 = vsub.f32 1.0, %v883_v20  ;;  %vm904_vm15 = vmor %vm902_vm8, %vm903_vm10 }
 0x159   : > { %v916_v29 = vadd.f32 %v2481_v61, %v915_v27  ;;  %v966_v36 = vand.u32 2147483647, %v3734_v44  ;;  %vm3775_vm14 = vcmp.eq.f32.partialorder %v891_v42, 8.507059e+37  ;;  %v968_v14 = vand.u32 2147483648, %v3734_v44 }
 0x15a   : > { %v901_v35 = vadd.f32 %v2483_v4, %v900_v55  ;;  %2490 = vrcp.f32 %v3765_v51  ;;  %v2487_v59 = vpop.eup %2486  ;;  %v885_v18 = vmul.f32 %v2485_v60, %v884_v30  ;;  %vm888_vm1 = vweird.f32 %v2485_v60  ;;  %v3787_v38 = vpop.xlane.xlu2 %655 }
 0x15b   : > { %v920_v26 = vsel %vm919_vm13, %v2481_v61, %v916_v29  ;;  %v894_v63 = vor.u32 1.1754944e-38, %v893_v46  ;;  %v958_v3 = vmul.f32 %v2487_v59, %v3734_v44  ;;  %vm962_vm2 = vweird.f32 %v3734_v44  ;;  %vm889_vm4 = vmor %vm887_vm12, %vm888_vm1 }
 0x15c   : > { %v925_v22 = vsel %vm3738_vm7, %v924_v49, %v920_v26  ;;  %v905_v12 = vsel %vm904_vm15, %v2483_v4, %v901_v35  ;;  %v886_v58 = vadd.f32 %v2485_v60, %v885_v18  ;;  %vm3792_vm3 = vcmp.eq.f32.partialorder %v966_v36, 8.507059e+37 }
 0x15d   : > { %v2489_v62 = vpop.eup %2488  ;;  %v926_v61 = vmul.f32 %v3200_v39, %v925_v22  ;;  %v910_v41 = vsel %vm3767_vm11, %v909_v28, %v905_v12  ;;  %v959_v39 = vsub.f32 1.0, %v958_v3  ;;  %v969_v0 = vor.u32 1.1754944e-38, %v968_v14 }
 0x15e   : > { %790 = vadd.xlane.f32.xlu2 %v3610_v6  ;;  %787 = vadd.xlane.f32.xlu1 %v3625_v40  ;;  %v911_v4 = vmul.f32 %v3206_v11, %v910_v41  ;;  %v943_v56 = vmul.f32 %v2489_v62, %v3749_v16  ;;  %v890_v33 = vsel %vm889_vm4, %v2485_v60, %v886_v58  ;;  %v951_v49 = vand.u32 2147483647, %v3749_v16  ;;  %v3820_v55 = vpop.xlane.xlu0 %649 }
 0x15f   : > { %784 = vadd.xlane.f32.xlu0 %v3593_v10  ;;  %1774 = vst.msk [vmem:[%s3688_s4 + $0x38] sm:$0xff] %vm230_vm0, %v926_v61  ;;  %v953_v6 = vand.u32 2147483648, %v3749_v16  ;;  %2492 = vrcp.f32 %v3787_v38  ;;  %v895_v40 = vsel %vm3775_vm14, %v894_v63, %v890_v33  ;;  %v960_v32 = vmul.f32 %v2487_v59, %v959_v39  ;;  %v3813_v10 = vpop.xlane.xlu1 %652 }
 0x160   : > { %v2491_v11 = vpop.eup %2490  ;;  %1773 = vst.msk [vmem:[%s3688_s4 + $0x30] sm:$0xff] %vm230_vm0, %v911_v4  ;;  %vm963_vm5 = vweird.f32 %v2487_v59  ;;  %v944_v21 = vsub.f32 1.0, %v943_v56  ;;  %v896_v60 = vmul.f32 %v3210_v13, %v895_v40  ;;  %vm947_vm6 = vweird.f32 %v3749_v16 }
 0x161   : > { %v928_v42 = vmul.f32 %v2491_v11, %v3765_v51  ;;  %vm932_vm7 = vweird.f32 %v3765_v51  ;;  %v961_v46 = vadd.f32 %v2487_v59, %v960_v32  ;;  %vm948_vm8 = vweird.f32 %v2489_v62  ;;  %vm964_vm9 = vmor %vm962_vm2, %vm963_vm5 }
 0x162   : > { %v945_v27 = vmul.f32 %v2489_v62, %v944_v21  ;;  %v936_v20 = vand.u32 2147483647, %v3765_v51  ;;  %1772 = vst.msk [vmem:[%s3688_s4 + $0x28] sm:$0xff] %vm230_vm0, %v896_v60  ;;  %vm3826_vm10 = vcmp.eq.f32.partialorder %v951_v49, 8.507059e+37  ;;  %v954_v54 = vor.u32 1.1754944e-38, %v953_v6  ;;  %vm949_vm11 = vmor %vm947_vm6, %vm948_vm8  ;;  %v3847_v16 = vpop.xlane.xlu2 %664 }
 0x163   : > { %v929_v29 = vsub.f32 1.0, %v928_v42  ;;  %2494 = vrcp.f32 %v3813_v10  ;;  %v965_v28 = vsel %vm964_vm9, %v2487_v59, %v961_v46  ;;  %v938_v36 = vand.u32 2147483648, %v3765_v51 }
 0x164   : > { %v946_v30 = vadd.f32 %v2489_v62, %v945_v27  ;;  %v1011_v35 = vand.u32 2147483647, %v3787_v38  ;;  %v970_v14 = vsel %vm3792_vm3, %v969_v0, %v965_v28  ;;  %vm933_vm12 = vweird.f32 %v2491_v11 }
 0x165   : > { %v2493_v5 = vpop.eup %2492  ;;  %v930_v44 = vmul.f32 %v2491_v11, %v929_v29  ;;  %2496 = vrcp.f32 %v3820_v55  ;;  %v971_v59 = vmul.f32 %v3224_v8, %v970_v14  ;;  %vm3842_vm13 = vcmp.eq.f32.partialorder %v936_v20, 8.507059e+37  ;;  %vm934_vm14 = vmor %vm932_vm7, %vm933_vm12 }
 0x166   : > { %799 = vadd.xlane.f32.xlu2 %v3653_v52  ;;  %796 = vadd.xlane.f32.xlu1 %v3657_v50  ;;  %v950_v26 = vsel %vm949_vm11, %v2489_v62, %v946_v30  ;;  %v1003_v63 = vmul.f32 %v2493_v5, %v3787_v38  ;;  %v1013_v50 = vand.u32 2147483648, %v3787_v38  ;;  %v996_v8 = vand.u32 2147483647, %v3813_v10  ;;  %v3881_v32 = vpop.xlane.xlu0 %658 }
 0x167   : > { %793 = vadd.xlane.f32.xlu0 %v3614_v7  ;;  %v955_v22 = vsel %vm3826_vm10, %v954_v54, %v950_v26  ;;  %v931_v52 = vadd.f32 %v2491_v11, %v930_v44  ;;  %1777 = vst.msk [vmem:[%s3688_s4 + $0x50] sm:$0xff] %vm230_vm0, %v971_v59  ;;  %v939_v3 = vor.u32 1.1754944e-38, %v938_v36  ;;  %v998_v7 = vand.u32 2147483648, %v3813_v10  ;;  %v3872_v4 = vpop.xlane.xlu1 %661 }
 0x168   : > { %v956_v12 = vmul.f32 %v3230_v57, %v955_v22  ;;  %v1004_v62 = vsub.f32 1.0, %v1003_v63  ;;  %vm1007_vm15 = vweird.f32 %v3787_v38  ;;  %vm3862_vm1 = vcmp.eq.f32.partialorder %v1011_v35, 8.507059e+37 }
 0x169   : > { %v2495_v61 = vpop.eup %2494  ;;  %v935_v41 = vsel %vm934_vm14, %v2491_v11, %v931_v52  ;;  %2498 = vrcp.f32 %v3847_v16  ;;  %vm1008_vm2 = vweird.f32 %v2493_v5  ;;  %v1014_v56 = vor.u32 1.1754944e-38, %v1013_v50 }
 0x16a   : > { %1776 = vst.msk [vmem:[%s3688_s4 + $0x48] sm:$0xff] %vm230_vm0, %v956_v12  ;;  %v940_v57 = vsel %vm3842_vm13, %v939_v3, %v935_v41  ;;  %v1005_v51 = vmul.f32 %v2493_v5, %v1004_v62  ;;  %v988_v47 = vmul.f32 %v2495_v61, %v3813_v10  ;;  %vm992_vm3 = vweird.f32 %v3813_v10  ;;  %vm1009_vm5 = vmor %vm1007_vm15, %vm1008_vm2  ;;  %v3899_v28 = vpop.xlane.xlu2 %673 }
 0x16b   : > { %v2497_v39 = vpop.eup %2496  ;;  %v941_v0 = vmul.f32 %v3234_v19, %v940_v57  ;;  %vm3876_vm4 = vcmp.eq.f32.partialorder %v996_v8, 8.507059e+37  ;;  %v999_v11 = vor.u32 1.1754944e-38, %v998_v7  ;;  %v981_v19 = vand.u32 2147483647, %v3820_v55 }
 0x16c   : > { %v1006_v49 = vadd.f32 %v2493_v5, %v1005_v51  ;;  %v989_v6 = vsub.f32 1.0, %v988_v47  ;;  %v973_v40 = vmul.f32 %v2497_v39, %v3820_v55  ;;  %v983_v21 = vand.u32 2147483648, %v3820_v55 }
 0x16d   : > { %1775 = vst.msk [vmem:[%s3688_s4 + $0x40] sm:$0xff] %vm230_vm0, %v941_v0  ;;  %v1056_v60 = vand.u32 2147483647, %v3847_v16  ;;  %2500 = vrcp.f32 %v3872_v4  ;;  %vm993_vm6 = vweird.f32 %v2495_v61  ;;  %vm977_vm7 = vweird.f32 %v3820_v55 }
 0x16e   : > { %805 = vadd.xlane.f32.xlu1 %v3723_v24  ;;  %v1010_v42 = vsel %vm1009_vm5, %v2493_v5, %v1006_v49  ;;  %v990_v46 = vmul.f32 %v2495_v61, %v989_v6  ;;  %v974_v27 = vsub.f32 1.0, %v973_v40  ;;  %vm978_vm8 = vweird.f32 %v2497_v39  ;;  %vm994_vm9 = vmor %vm992_vm3, %vm993_vm6  ;;  %v3946_v47 = vpop.xlane.xlu0 %667 }
 0x16f   : > { %802 = vadd.xlane.f32.xlu0 %v3646_v48  ;;  %v2499_v20 = vpop.eup %2498  ;;  %v1015_v38 = vsel %vm3862_vm1, %v1014_v56, %v1010_v42  ;;  %2502 = vrcp.f32 %v3881_v32  ;;  %vm3903_vm10 = vcmp.eq.f32.partialorder %v981_v19, 8.507059e+37  ;;  %v984_v30 = vor.u32 1.1754944e-38, %v983_v21  ;;  %vm979_vm13 = vmor %vm977_vm7, %vm978_vm8  ;;  %v3924_v52 = vpop.xlane.xlu1 %670 }
 0x170   : > { %v1016_v13 = vmul.f32 %v3248_v1, %v1015_v38  ;;  %v991_v54 = vadd.f32 %v2495_v61, %v990_v46  ;;  %v975_v24 = vmul.f32 %v2497_v39, %v974_v27  ;;  %v1048_v29 = vmul.f32 %v2499_v20, %v3847_v16 }
 0x171   : > { %vm1052_vm11 = vweird.f32 %v3847_v16  ;;  %v1058_v36 = vand.u32 2147483648, %v3847_v16  ;;  %vm3911_vm12 = vcmp.eq.f32.partialorder %v1056_v60, 8.507059e+37  ;;  %vm1053_vm14 = vweird.f32 %v2499_v20 }
 0x172   : > { %1780 = vst.msk [vmem:[%s3688_s4 + $0x68] sm:$0xff] %vm230_vm0, %v1016_v13  ;;  %v995_v1 = vsel %vm994_vm9, %v2495_v61, %v991_v54  ;;  %v976_v35 = vadd.f32 %v2497_v39, %v975_v24  ;;  %v1049_v5 = vsub.f32 1.0, %v1048_v29  ;;  %v1041_v59 = vand.u32 2147483647, %v3872_v4  ;;  %vm1054_vm1 = vmor %vm1052_vm11, %vm1053_vm14 }
 0x173   : > { %v2501_v10 = vpop.eup %2500  ;;  %v1000_v44 = vsel %vm3876_vm4, %v999_v11, %v995_v1  ;;  %2504 = vrcp.f32 %v3899_v28  ;;  %v1059_v55 = vor.u32 1.1754944e-38, %v1058_v36  ;;  %vm1037_vm15 = vweird.f32 %v3872_v4  ;;  %v3953_v11 = vpop.xlane.xlu2 %682 }
 0x174   : > { %v1001_v26 = vmul.f32 %v3254_v45, %v1000_v44  ;;  %v980_v18 = vsel %vm979_vm13, %v2497_v39, %v976_v35  ;;  %v1050_v63 = vmul.f32 %v2499_v20, %v1049_v5  ;;  %v1033_v22 = vmul.f32 %v2501_v10, %v3872_v4 }
 0x175   : > { %v2503_v50 = vpop.eup %2502  ;;  %v985_v8 = vsel %vm3903_vm10, %v984_v30, %v980_v18  ;;  %v1043_v12 = vand.u32 2147483648, %v3872_v4  ;;  %vm3937_vm2 = vcmp.eq.f32.partialorder %v1041_v59, 8.507059e+37  ;;  %v1026_v41 = vand.u32 2147483647, %v3881_v32 }
 0x176   : > { %1779 = vst.msk [vmem:[%s3688_s4 + $0x60] sm:$0xff] %vm230_vm0, %v1001_v26  ;;  %v986_v45 = vmul.f32 %v3258_v25, %v985_v8  ;;  %v1051_v3 = vadd.f32 %v2499_v20, %v1050_v63  ;;  %v1034_v62 = vsub.f32 1.0, %v1033_v22  ;;  %v1018_v7 = vmul.f32 %v2503_v50, %v3881_v32  ;;  %v3999_v59 = vpop.xlane.xlu0 %676 }
 0x177   : > { %v1028_v58 = vand.u32 2147483648, %v3881_v32  ;;  %2506 = vrcp.f32 %v3924_v52  ;;  %vm1038_vm3 = vweird.f32 %v2501_v10  ;;  %v1044_v0 = vor.u32 1.1754944e-38, %v1043_v12  ;;  %v3975_v29 = vpop.xlane.xlu1 %679 }
 0x178   : > { %1778 = vst.msk [vmem:[%s3688_s4 + $0x58] sm:$0xff] %vm230_vm0, %v986_v45  ;;  %v1055_v25 = vsel %vm1054_vm1, %v2499_v20, %v1051_v3  ;;  %v1035_v57 = vmul.f32 %v2501_v10, %v1034_v62  ;;  %v1019_v51 = vsub.f32 1.0, %v1018_v7  ;;  %vm1022_vm4 = vweird.f32 %v3881_v32  ;;  %vm1039_vm6 = vmor %vm1037_vm15, %vm1038_vm3 }
 0x179   : > { %v2505_v16 = vpop.eup %2504  ;;  %v1060_v39 = vsel %vm3911_vm12, %v1059_v55, %v1055_v25  ;;  %vm1023_vm5 = vweird.f32 %v2503_v50  ;;  %vm3957_vm7 = vcmp.eq.f32.partialorder %v1026_v41, 8.507059e+37  ;;  %v1029_v19 = vor.u32 1.1754944e-38, %v1028_v58 }
 0x17a   : > { %v1061_v56 = vmul.f32 %v3272_v34, %v1060_v39  ;;  %v1036_v33 = vadd.f32 %v2501_v10, %v1035_v57  ;;  %v1020_v49 = vmul.f32 %v2503_v50, %v1019_v51  ;;  %v1093_v6 = vmul.f32 %v2505_v16, %v3899_v28  ;;  %vm1024_vm8 = vmor %vm1022_vm4, %vm1023_vm5 }
 0x17b   : > { %v1101_v21 = vand.u32 2147483647, %v3899_v28  ;;  %2508 = vrcp.f32 %v3946_v47  ;;  %v1103_v46 = vand.u32 2147483648, %v3899_v28  ;;  %vm1098_vm9 = vweird.f32 %v2505_v16  ;;  %v4018_v41 = vpop.xlane.xlu2 %691 }
 0x17c   : > { %1783 = vst.msk [vmem:[%s3688_s4 + $0x80] sm:$0xff] %vm230_vm0, %v1061_v56  ;;  %v1040_v34 = vsel %vm1039_vm6, %v2501_v10, %v1036_v33  ;;  %v1021_v60 = vadd.f32 %v2503_v50, %v1020_v49  ;;  %v1094_v42 = vsub.f32 1.0, %v1093_v6  ;;  %v1086_v20 = vand.u32 2147483647, %v3924_v52  ;;  %v5128_v56 = vld [vmem:[#allocation27_spill] sm:$0xff] }
 0x17d   : > { %v2507_v27 = vpop.eup %2506  ;;  %v1045_v4 = vsel %vm3937_vm2, %v1044_v0, %v1040_v34  ;;  %2510 = vrcp.f32 %v3953_v11  ;;  %vm1097_vm10 = vweird.f32 %v3899_v28  ;;  %vm3980_vm11 = vcmp.eq.f32.partialorder %v1101_v21, 8.507059e+37 }
 0x17e   : > { %v1046_v38 = vmul.f32 %v3278_v2, %v1045_v4  ;;  %v1025_v13 = vsel %vm1024_vm8, %v2503_v50, %v1021_v60  ;;  %v1095_v54 = vmul.f32 %v2505_v16, %v1094_v42  ;;  %v1078_v24 = vmul.f32 %v2507_v27, %v3924_v52  ;;  %vm1099_vm13 = vmor %vm1097_vm10, %vm1098_vm9  ;;  %v4047_v4 = vpop.xlane.xlu0 %685 }
 0x17f   : > { %v1030_v48 = vsel %vm3957_vm7, %v1029_v19, %v1025_v13  ;;  %v1088_v30 = vand.u32 2147483648, %v3924_v52  ;;  %vm1082_vm12 = vweird.f32 %v3924_v52  ;;  %v1104_v5 = vor.u32 1.1754944e-38, %v1103_v46  ;;  %v4025_v0 = vpop.xlane.xlu1 %688 }
 0x180   : > { %1782 = vst.msk [vmem:[%s3688_s4 + $0x78] sm:$0xff] %vm230_vm0, %v1046_v38  ;;  %v1031_v2 = vmul.f32 %v3282_v31, %v1030_v48  ;;  %v1096_v36 = vadd.f32 %v2505_v16, %v1095_v54  ;;  %v1079_v1 = vsub.f32 1.0, %v1078_v24  ;;  %vm3990_vm14 = vcmp.eq.f32.partialorder %v1086_v20, 8.507059e+37 }
 0x181   : > { %v2509_v35 = vpop.eup %2508  ;;  %v1071_v14 = vand.u32 2147483647, %v3946_v47  ;;  %2512 = vrcp.f32 %v3975_v29  ;;  %vm1083_vm15 = vweird.f32 %v2507_v27  ;;  %v1089_v63 = vor.u32 1.1754944e-38, %v1088_v30 }
 0x182   : > { %1781 = vst.msk [vmem:[%s3688_s4 + $0x70] sm:$0xff] %vm230_vm0, %v1031_v2  ;;  %v1100_v10 = vsel %vm1099_vm13, %v2505_v16, %v1096_v36  ;;  %v1080_v31 = vmul.f32 %v2507_v27, %v1079_v1  ;;  %v1063_v44 = vmul.f32 %v2509_v35, %v3946_v47  ;;  %vm1067_vm1 = vweird.f32 %v3946_v47  ;;  %vm1084_vm2 = vmor %vm1082_vm12, %vm1083_vm15 }
 0x183   : > { %v2511_v26 = vpop.eup %2510  ;;  %v1105_v18 = vsel %vm3980_vm11, %v1104_v5, %v1100_v10  ;;  %v1073_v22 = vand.u32 2147483648, %v3946_v47  ;;  %vm4009_vm3 = vcmp.eq.f32.partialorder %v1071_v14, 8.507059e+37  ;;  %v1146_v3 = vand.u32 2147483647, %v3953_v11  ;;  %v4071_v36 = vpop.xlane.xlu2 %700 }
 0x184   : > { %v1106_v50 = vmul.f32 %v3296_v15, %v1105_v18  ;;  %v1081_v8 = vadd.f32 %v2507_v27, %v1080_v31  ;;  %v1064_v55 = vsub.f32 1.0, %v1063_v44  ;;  %v1138_v12 = vmul.f32 %v2511_v26, %v3953_v11 }
 0x185   : > { %v1148_v62 = vand.u32 2147483648, %v3953_v11  ;;  %2514 = vrcp.f32 %v3999_v59  ;;  %vm1068_vm4 = vweird.f32 %v2509_v35  ;;  %v1074_v25 = vor.u32 1.1754944e-38, %v1073_v22 }
 0x186   : > { %1786 = vst.msk [vmem:[%s3688_s4 + $0x98] sm:$0xff] %vm230_vm0, %v1106_v50  ;;  %v1085_v15 = vsel %vm1084_vm2, %v2507_v27, %v1081_v8  ;;  %v1065_v7 = vmul.f32 %v2509_v35, %v1064_v55  ;;  %v1139_v61 = vsub.f32 1.0, %v1138_v12  ;;  %vm1142_vm5 = vweird.f32 %v3953_v11  ;;  %vm1069_vm7 = vmor %vm1067_vm1, %vm1068_vm4 }
 0x187   : > { %v2513_v52 = vpop.eup %2512  ;;  %v1090_v58 = vsel %vm3990_vm14, %v1089_v63, %v1085_v15  ;;  %vm1143_vm6 = vweird.f32 %v2511_v26  ;;  %vm4029_vm8 = vcmp.eq.f32.partialorder %v1146_v3, 8.507059e+37  ;;  %v1149_v33 = vor.u32 1.1754944e-38, %v1148_v62  ;;  %v4090_v8 = vpop.xlane.xlu1 %697 }
 0x188   : > { %v1091_v57 = vmul.f32 %v3302_v17, %v1090_v58  ;;  %v1066_v51 = vadd.f32 %v2509_v35, %v1065_v7  ;;  %v1140_v16 = vmul.f32 %v2511_v26, %v1139_v61  ;;  %v1123_v39 = vmul.f32 %v2513_v52, %v3975_v29  ;;  %vm1144_vm9 = vmor %vm1142_vm5, %vm1143_vm6  ;;  %v4097_v7 = vpop.xlane.xlu0 %694 }
 0x189   : > { %v1131_v49 = vand.u32 2147483647, %v3975_v29  ;;  %2516 = vrcp.f32 %v4018_v41  ;;  %v1133_v19 = vand.u32 2147483648, %v3975_v29  ;;  %vm1128_vm10 = vweird.f32 %v2513_v52 }
 0x18a   : > { %1785 = vst.msk [vmem:[%s3688_s4 + $0x90] sm:$0xff] %vm230_vm0, %v1091_v57  ;;  %v1070_v17 = vsel %vm1069_vm7, %v2509_v35, %v1066_v51  ;;  %v1141_v6 = vadd.f32 %v2511_v26, %v1140_v16  ;;  %v1124_v40 = vsub.f32 1.0, %v1123_v39  ;;  %v1116_v34 = vand.u32 2147483647, %v3999_v59 }
 0x18b   : > { %v2515_v21 = vpop.eup %2514  ;;  %v1075_v47 = vsel %vm4009_vm3, %v1074_v25, %v1070_v17  ;;  %2518 = vrcp.f32 %v4025_v0  ;;  %vm1127_vm11 = vweird.f32 %v3975_v29  ;;  %vm4052_vm12 = vcmp.eq.f32.partialorder %v1131_v49, 8.507059e+37 }
 0x18c   : > { %v1076_v60 = vmul.f32 %v3306_v37, %v1075_v47  ;;  %v1145_v42 = vsel %vm1144_vm9, %v2511_v26, %v1141_v6  ;;  %v1125_v46 = vmul.f32 %v2513_v52, %v1124_v40  ;;  %v1108_v27 = vmul.f32 %v2515_v21, %v3999_v59  ;;  %vm1129_vm14 = vmor %vm1127_vm11, %vm1128_vm10  ;;  %v4119_v40 = vpop.xlane.xlu2 %709  ;;  %v5131_v47 = vld [vmem:[#allocation28_spill] sm:$0xff] }
 0x18d   : > { %v1150_v20 = vsel %vm4029_vm8, %v1149_v33, %v1145_v42  ;;  %v1118_v38 = vand.u32 2147483648, %v3999_v59  ;;  %vm1112_vm13 = vweird.f32 %v3999_v59  ;;  %v1134_v48 = vor.u32 1.1754944e-38, %v1133_v19 }
 0x18e   : > { %1784 = vst.msk [vmem:[%s3688_s4 + $0x88] sm:$0xff] %vm230_vm0, %v1076_v60  ;;  %v1151_v37 = vmul.f32 %v3320_v53, %v1150_v20  ;;  %v1126_v13 = vadd.f32 %v2513_v52, %v1125_v46  ;;  %v1109_v54 = vsub.f32 1.0, %v1108_v27  ;;  %vm4062_vm15 = vcmp.eq.f32.partialorder %v1116_v34, 8.507059e+37 }
 0x18f   : > { %v2517_v24 = vpop.eup %2516  ;;  %v1191_v32 = vand.u32 2147483647, %v4018_v41  ;;  %2520 = vrcp.f32 %v4047_v4  ;;  %vm1113_vm1 = vweird.f32 %v2515_v21  ;;  %v1119_v5 = vor.u32 1.1754944e-38, %v1118_v38 }
 0x190   : > { %1789 = vst.msk [vmem:[%s3688_s4 + $0xb0] sm:$0xff] %vm230_vm0, %v1151_v37  ;;  %v1130_v30 = vsel %vm1129_vm14, %v2513_v52, %v1126_v13  ;;  %v1110_v53 = vmul.f32 %v2515_v21, %v1109_v54  ;;  %v1183_v2 = vmul.f32 %v2517_v24, %v4018_v41  ;;  %vm1187_vm2 = vweird.f32 %v4018_v41  ;;  %vm1114_vm3 = vmor %vm1112_vm13, %vm1113_vm1  ;;  %v4143_v13 = vpop.xlane.xlu1 %706 }
 0x191   : > { %v2519_v1 = vpop.eup %2518  ;;  %v1135_v35 = vsel %vm4052_vm12, %v1134_v48, %v1130_v30  ;;  %v1193_v28 = vand.u32 2147483648, %v4018_v41  ;;  %vm4081_vm4 = vcmp.eq.f32.partialorder %v1191_v32, 8.507059e+37  ;;  %v1176_v18 = vand.u32 2147483647, %v4025_v0  ;;  %v5134_v32 = vld [vmem:[#allocation29_spill] sm:$0xff] }
 0x192   : > { %v1136_v14 = vmul.f32 %v3326_v23, %v1135_v35  ;;  %v1111_v10 = vadd.f32 %v2515_v21, %v1110_v53  ;;  %v1184_v31 = vsub.f32 1.0, %v1183_v2  ;;  %v1168_v44 = vmul.f32 %v2519_v1, %v4025_v0 }
 0x193   : > { %v1178_v63 = vand.u32 2147483648, %v4025_v0  ;;  %2522 = vrcp.f32 %v4071_v36  ;;  %vm1188_vm5 = vweird.f32 %v2517_v24  ;;  %v1194_v12 = vor.u32 1.1754944e-38, %v1193_v28 }
 0x194   : > { %1788 = vst.msk [vmem:[%s3688_s4 + $0xa8] sm:$0xff] %vm230_vm0, %v1136_v14  ;;  %v1115_v23 = vsel %vm1114_vm3, %v2515_v21, %v1111_v10  ;;  %v1185_v22 = vmul.f32 %v2517_v24, %v1184_v31  ;;  %v1169_v50 = vsub.f32 1.0, %v1168_v44  ;;  %vm1172_vm6 = vweird.f32 %v4025_v0  ;;  %vm1189_vm8 = vmor %vm1187_vm2, %vm1188_vm5  ;;  %v4162_v44 = vpop.xlane.xlu0 %703 }
 0x195   : > { %v2521_v59 = vpop.eup %2520  ;;  %v1120_v55 = vsel %vm4062_vm15, %v1119_v5, %v1115_v23  ;;  %vm1173_vm7 = vweird.f32 %v2519_v1  ;;  %vm4101_vm9 = vcmp.eq.f32.partialorder %v1176_v18, 8.507059e+37  ;;  %v1179_v52 = vor.u32 1.1754944e-38, %v1178_v63  ;;  %v5137_v63 = vld [vmem:[#allocation30_spill] sm:$0xff] }
 0x196   : > { %v1121_v45 = vmul.f32 %v3330_v43, %v1120_v55  ;;  %v1186_v3 = vadd.f32 %v2517_v24, %v1185_v22  ;;  %v1170_v62 = vmul.f32 %v2519_v1, %v1169_v50  ;;  %v1153_v15 = vmul.f32 %v2521_v59, %v4047_v4  ;;  %vm1174_vm10 = vmor %vm1172_vm6, %vm1173_vm7  ;;  %v4169_v55 = vpop.xlane.xlu2 %718 }
 0x197   : > { %v1161_v58 = vand.u32 2147483647, %v4047_v4  ;;  %2524 = vrcp.f32 %v4090_v8  ;;  %v1163_v51 = vand.u32 2147483648, %v4047_v4  ;;  %vm1158_vm11 = vweird.f32 %v2521_v59 }
 0x198   : > { %1787 = vst.msk [vmem:[%s3688_s4 + $0xa0] sm:$0xff] %vm230_vm0, %v1121_v45  ;;  %v1190_v43 = vsel %vm1189_vm8, %v2517_v24, %v1186_v3  ;;  %v1171_v25 = vadd.f32 %v2519_v1, %v1170_v62  ;;  %v1154_v57 = vsub.f32 1.0, %v1153_v15  ;;  %v1236_v39 = vand.u32 2147483647, %v4071_v36 }
 0x199   : > { %v2523_v16 = vpop.eup %2522  ;;  %v1195_v41 = vsel %vm4081_vm4, %v1194_v12, %v1190_v43  ;;  %2526 = vrcp.f32 %v4097_v7  ;;  %vm1157_vm12 = vweird.f32 %v4047_v4  ;;  %vm4124_vm13 = vcmp.eq.f32.partialorder %v1161_v58, 8.507059e+37 }
 0x19a   : > { %v1196_v33 = vmul.f32 %v5128_v56, %v1195_v41  ;;  %v1175_v49 = vsel %vm1174_vm10, %v2519_v1, %v1171_v25  ;;  %v1155_v17 = vmul.f32 %v2521_v59, %v1154_v57  ;;  %v1228_v6 = vmul.f32 %v2523_v16, %v4071_v36  ;;  %vm1159_vm15 = vmor %vm1157_vm12, %vm1158_vm11  ;;  %v5140_v25 = vld [vmem:[#allocation31_spill] sm:$0xff] }
 0x19b   : > { %v1180_v19 = vsel %vm4101_vm9, %v1179_v52, %v1175_v49  ;;  %v1238_v21 = vand.u32 2147483648, %v4071_v36  ;;  %vm1232_vm14 = vweird.f32 %v4071_v36  ;;  %v1164_v27 = vor.u32 1.1754944e-38, %v1163_v51  ;;  %v5143_v49 = vld [vmem:[#allocation32_spill] sm:$0xff] }
 0x19c   : > { %1792 = vst.msk [vmem:[%s3688_s4 + $0xc8] sm:$0xff] %vm230_vm0, %v1196_v33  ;;  %v1181_v34 = vmul.f32 %v5131_v47, %v1180_v19  ;;  %v1156_v60 = vadd.f32 %v2521_v59, %v1155_v17  ;;  %v1229_v42 = vsub.f32 1.0, %v1228_v6  ;;  %vm4134_vm1 = vcmp.eq.f32.partialorder %v1236_v39, 8.507059e+37  ;;  %v4191_v39 = vpop.xlane.xlu1 %715 }
 0x19d   : > { %v2525_v46 = vpop.eup %2524  ;;  %v1221_v20 = vand.u32 2147483647, %v4090_v8  ;;  %2528 = vrcp.f32 %v4119_v40  ;;  %vm1233_vm2 = vweird.f32 %v2523_v16  ;;  %v1239_v48 = vor.u32 1.1754944e-38, %v1238_v21 }
 0x19e   : > { %1791 = vst.msk [vmem:[%s3688_s4 + $0xc0] sm:$0xff] %vm230_vm0, %v1181_v34  ;;  %v1160_v11 = vsel %vm1159_vm15, %v2521_v59, %v1156_v60  ;;  %v1230_v38 = vmul.f32 %v2523_v16, %v1229_v42  ;;  %v1213_v37 = vmul.f32 %v2525_v46, %v4090_v8  ;;  %vm1217_vm3 = vweird.f32 %v4090_v8  ;;  %vm1234_vm4 = vmor %vm1232_vm14, %vm1233_vm2  ;;  %v4234_v35 = vpop.xlane.xlu2 %727 }
 0x19f   : > { %v2527_v54 = vpop.eup %2526  ;;  %v1165_v24 = vsel %vm4124_vm13, %v1164_v27, %v1160_v11  ;;  %v1223_v29 = vand.u32 2147483648, %v4090_v8  ;;  %vm4153_vm5 = vcmp.eq.f32.partialorder %v1221_v20, 8.507059e+37  ;;  %v1206_v5 = vand.u32 2147483647, %v4097_v7 }
 0x1a0   : > { %v1166_v30 = vmul.f32 %v5134_v32, %v1165_v24  ;;  %v1231_v53 = vadd.f32 %v2523_v16, %v1230_v38  ;;  %v1214_v2 = vsub.f32 1.0, %v1213_v37  ;;  %v1198_v1 = vmul.f32 %v2527_v54, %v4097_v7  ;;  %v5146_v38 = vld [vmem:[#allocation33_spill] sm:$0xff] }
 0x1a1   : > { %v1208_v28 = vand.u32 2147483648, %v4097_v7  ;;  %2530 = vrcp.f32 %v4143_v13  ;;  %vm1218_vm6 = vweird.f32 %v2525_v46  ;;  %v1224_v18 = vor.u32 1.1754944e-38, %v1223_v29 }
 0x1a2   : > { %1790 = vst.msk [vmem:[%s3688_s4 + $0xb8] sm:$0xff] %vm230_vm0, %v1166_v30  ;;  %v1235_v14 = vsel %vm1234_vm4, %v2523_v16, %v1231_v53  ;;  %v1215_v10 = vmul.f32 %v2525_v46, %v1214_v2  ;;  %v1199_v31 = vsub.f32 1.0, %v1198_v1  ;;  %vm1202_vm7 = vweird.f32 %v4097_v7  ;;  %vm1219_vm9 = vmor %vm1217_vm3, %vm1218_vm6 }
 0x1a3   : > { %v2529_v36 = vpop.eup %2528  ;;  %v1240_v26 = vsel %vm4134_vm1, %v1239_v48, %v1235_v14  ;;  %vm1203_vm8 = vweird.f32 %v2527_v54  ;;  %vm4173_vm10 = vcmp.eq.f32.partialorder %v1206_v5, 8.507059e+37  ;;  %v1209_v45 = vor.u32 1.1754944e-38, %v1208_v28  ;;  %v5149_v14 = vld [vmem:[#allocation34_spill] sm:$0xff] }
 0x1a4   : > { %v1241_v23 = vmul.f32 %v5137_v63, %v1240_v26  ;;  %v1216_v22 = vadd.f32 %v2525_v46, %v1215_v10  ;;  %v1200_v50 = vmul.f32 %v2527_v54, %v1199_v31  ;;  %v1273_v59 = vmul.f32 %v2529_v36, %v4119_v40  ;;  %vm1204_vm11 = vmor %vm1202_vm7, %vm1203_vm8 }
 0x1a5   : > { %v1281_v3 = vand.u32 2147483647, %v4119_v40  ;;  %2532 = vrcp.f32 %v4162_v44  ;;  %v1283_v52 = vand.u32 2147483648, %v4119_v40  ;;  %vm1278_vm12 = vweird.f32 %v2529_v36 }
 0x1a6   : > { %1795 = vst.msk [vmem:[%s3688_s4 + $0xe0] sm:$0xff] %vm230_vm0, %v1241_v23  ;;  %v1220_v62 = vsel %vm1219_vm9, %v2525_v46, %v1216_v22  ;;  %v1201_v15 = vadd.f32 %v2527_v54, %v1200_v50  ;;  %v1274_v61 = vsub.f32 1.0, %v1273_v59  ;;  %v1266_v43 = vand.u32 2147483647, %v4143_v13  ;;  %v4215_v46 = vpop.xlane.xlu0 %712 }
 0x1a7   : > { %v2531_v58 = vpop.eup %2530  ;;  %v1225_v8 = vsel %vm4153_vm5, %v1224_v18, %v1220_v62  ;;  %2534 = vrcp.f32 %v4169_v55  ;;  %vm1277_vm13 = vweird.f32 %v4119_v40  ;;  %vm4196_vm14 = vcmp.eq.f32.partialorder %v1281_v3, 8.507059e+37  ;;  %v4241_v18 = vpop.xlane.xlu1 %724 }
 0x1a8   : > { %v1226_v57 = vmul.f32 %v5140_v25, %v1225_v8  ;;  %v1205_v51 = vsel %vm1204_vm11, %v2527_v54, %v1201_v15  ;;  %v1275_v16 = vmul.f32 %v2529_v36, %v1274_v61  ;;  %v1258_v41 = vmul.f32 %v2531_v58, %v4143_v13  ;;  %vm1279_vm1 = vmor %vm1277_vm13, %vm1278_vm12  ;;  %v5152_v15 = vld [vmem:[#allocation35_spill] sm:$0xff] }
 0x1a9   : > { %v1210_v56 = vsel %vm4173_vm10, %v1209_v45, %v1205_v51  ;;  %v1268_v33 = vand.u32 2147483648, %v4143_v13  ;;  %vm1262_vm15 = vweird.f32 %v4143_v13  ;;  %v1284_v21 = vor.u32 1.1754944e-38, %v1283_v52  ;;  %v5155_v51 = vld [vmem:[#allocation3_spill] sm:$0xff] }
 0x1aa   : > { %1794 = vst.msk [vmem:[%s3688_s4 + $0xd8] sm:$0xff] %vm230_vm0, %v1226_v57  ;;  %v1211_v17 = vmul.f32 %v5143_v49, %v1210_v56  ;;  %v1276_v6 = vadd.f32 %v2529_v36, %v1275_v16  ;;  %v1259_v19 = vsub.f32 1.0, %v1258_v41  ;;  %vm4206_vm2 = vcmp.eq.f32.partialorder %v1266_v43, 8.507059e+37 }
 0x1ab   : > { %v2533_v0 = vpop.eup %2532  ;;  %v1251_v47 = vand.u32 2147483647, %v4162_v44  ;;  %2536 = vrcp.f32 %v4191_v39  ;;  %vm1263_vm3 = vweird.f32 %v2531_v58  ;;  %v1269_v20 = vor.u32 1.1754944e-38, %v1268_v33 }
 0x1ac   : > { %1793 = vst.msk [vmem:[%s3688_s4 + $0xd0] sm:$0xff] %vm230_vm0, %v1211_v17  ;;  %v1280_v34 = vsel %vm1279_vm1, %v2529_v36, %v1276_v6  ;;  %v1260_v60 = vmul.f32 %v2531_v58, %v1259_v19  ;;  %v1243_v42 = vmul.f32 %v2533_v0, %v4162_v44  ;;  %vm1247_vm4 = vweird.f32 %v4162_v44  ;;  %vm1264_vm5 = vmor %vm1262_vm15, %vm1263_vm3 }
 0x1ad   : > { %v2535_v27 = vpop.eup %2534  ;;  %v1285_v4 = vsel %vm4196_vm14, %v1284_v21, %v1280_v34  ;;  %v1253_v11 = vand.u32 2147483648, %v4162_v44  ;;  %vm4225_vm6 = vcmp.eq.f32.partialorder %v1251_v47, 8.507059e+37  ;;  %v1326_v32 = vand.u32 2147483647, %v4169_v55 }
 0x1ae   : > { %v1286_v37 = vmul.f32 %v5146_v38, %v1285_v4  ;;  %v1261_v54 = vadd.f32 %v2531_v58, %v1260_v60  ;;  %v1244_v24 = vsub.f32 1.0, %v1243_v42  ;;  %v1318_v48 = vmul.f32 %v2535_v27, %v4169_v55  ;;  %v4263_v43 = vpop.xlane.xlu0 %721  ;;  %v5158_v60 = vld [vmem:[#allocation36_spill] sm:$0xff] }
 0x1af   : > { %v1328_v30 = vand.u32 2147483648, %v4169_v55  ;;  %2538 = vrcp.f32 %v4215_v46  ;;  %vm1248_vm7 = vweird.f32 %v2533_v0  ;;  %v1254_v28 = vor.u32 1.1754944e-38, %v1253_v11  ;;  %v4306_v29 = vpop.xlane.xlu1 %733 }
 0x1b0   : > { %1798 = vst.msk [vmem:[%s3688_s4 + $0xf8] sm:$0xff] %vm230_vm0, %v1286_v37  ;;  %v1265_v53 = vsel %vm1264_vm5, %v2531_v58, %v1261_v54  ;;  %v1245_v2 = vmul.f32 %v2533_v0, %v1244_v24  ;;  %v1319_v1 = vsub.f32 1.0, %v1318_v48  ;;  %vm1322_vm8 = vweird.f32 %v4169_v55  ;;  %vm1249_vm10 = vmor %vm1247_vm4, %vm1248_vm7 }
 0x1b1   : > { %v2537_v13 = vpop.eup %2536  ;;  %v1270_v5 = vsel %vm4206_vm2, %v1269_v20, %v1265_v53  ;;  %vm1323_vm9 = vweird.f32 %v2535_v27  ;;  %vm4245_vm11 = vcmp.eq.f32.partialorder %v1326_v32, 8.507059e+37  ;;  %v1329_v23 = vor.u32 1.1754944e-38, %v1328_v30  ;;  %v5161_v53 = vld [vmem:[#allocation4_spill] sm:$0xff] }
 0x1b2   : > { %v1271_v10 = vmul.f32 %v5149_v14, %v1270_v5  ;;  %v1246_v31 = vadd.f32 %v2533_v0, %v1245_v2  ;;  %v1320_v36 = vmul.f32 %v2535_v27, %v1319_v1  ;;  %v1303_v26 = vmul.f32 %v2537_v13, %v4191_v39  ;;  %vm1324_vm12 = vmor %vm1322_vm8, %vm1323_vm9 }
 0x1b3   : > { %v1311_v22 = vand.u32 2147483647, %v4191_v39  ;;  %2540 = vrcp.f32 %v4234_v35  ;;  %v1313_v45 = vand.u32 2147483648, %v4191_v39  ;;  %vm1308_vm13 = vweird.f32 %v2537_v13 }
 0x1b4   : > { %1797 = vst.msk [vmem:[%s3688_s4 + $0xf0] sm:$0xff] %vm230_vm0, %v1271_v10  ;;  %v1250_v50 = vsel %vm1249_vm10, %v2533_v0, %v1246_v31  ;;  %v1321_v59 = vadd.f32 %v2535_v27, %v1320_v36  ;;  %v1304_v12 = vsub.f32 1.0, %v1303_v26  ;;  %v1296_v62 = vand.u32 2147483647, %v4215_v46  ;;  %v4287_v0 = vpop.xlane.xlu2 %736 }
 0x1b5   : > { %v2539_v3 = vpop.eup %2538  ;;  %v1255_v44 = vsel %vm4225_vm6, %v1254_v28, %v1250_v50  ;;  %2542 = vrcp.f32 %v4241_v18  ;;  %vm1307_vm14 = vweird.f32 %v4191_v39  ;;  %vm4268_vm15 = vcmp.eq.f32.partialorder %v1311_v22, 8.507059e+37 }
 0x1b6   : > { %v1256_v61 = vmul.f32 %v5152_v15, %v1255_v44  ;;  %v1325_v52 = vsel %vm1324_vm12, %v2535_v27, %v1321_v59  ;;  %v1305_v58 = vmul.f32 %v2537_v13, %v1304_v12  ;;  %v1288_v8 = vmul.f32 %v2539_v3, %v4215_v46  ;;  %vm1309_vm2 = vmor %vm1307_vm14, %vm1308_vm13  ;;  %v4313_v28 = vpop.xlane.xlu0 %730  ;;  %v5164_v59 = vld [vmem:[#allocation6_spill] sm:$0xff] }
 0x1b7   : > { %v1330_v25 = vsel %vm4245_vm11, %v1329_v23, %v1325_v52  ;;  %v1298_v57 = vand.u32 2147483648, %v4215_v46  ;;  %vm1292_vm1 = vweird.f32 %v4215_v46  ;;  %v1314_v33 = vor.u32 1.1754944e-38, %v1313_v45  ;;  %v5167_v52 = vld [vmem:[#allocation7_spill] sm:$0xff] }
 0x1b8   : > { %1796 = vst.msk [vmem:[%s3688_s4 + $0xe8] sm:$0xff] %vm230_vm0, %v1256_v61  ;;  %v1331_v16 = vmul.f32 %v5155_v51, %v1330_v25  ;;  %v1306_v41 = vadd.f32 %v2537_v13, %v1305_v58  ;;  %v1289_v56 = vsub.f32 1.0, %v1288_v8  ;;  %vm4278_vm3 = vcmp.eq.f32.partialorder %v1296_v62, 8.507059e+37 }
 0x1b9   : > { %v2541_v7 = vpop.eup %2540  ;;  %v1371_v49 = vand.u32 2147483647, %v4234_v35  ;;  %2544 = vrcp.f32 %v4263_v43  ;;  %vm1293_vm4 = vweird.f32 %v2539_v3  ;;  %v1299_v47 = vor.u32 1.1754944e-38, %v1298_v57 }
 0x1ba   : > { %1801 = vst.msk [vmem:[%s3688_s4 + $0x110] sm:$0xff] %vm230_vm0, %v1331_v16  ;;  %v1310_v17 = vsel %vm1309_vm2, %v2537_v13, %v1306_v41  ;;  %v1290_v6 = vmul.f32 %v2539_v3, %v1289_v56  ;;  %v1363_v19 = vmul.f32 %v2541_v7, %v4234_v35  ;;  %vm1367_vm5 = vweird.f32 %v4234_v35  ;;  %vm1294_vm6 = vmor %vm1292_vm1, %vm1293_vm4 }
 0x1bb   : > { %v2543_v21 = vpop.eup %2542  ;;  %v1315_v40 = vsel %vm4268_vm15, %v1314_v33, %v1310_v17  ;;  %v1373_v34 = vand.u32 2147483648, %v4234_v35  ;;  %vm4297_vm7 = vcmp.eq.f32.partialorder %v1371_v49, 8.507059e+37  ;;  %v1356_v38 = vand.u32 2147483647, %v4241_v18 }
 0x1bc   : > { %v1316_v42 = vmul.f32 %v5158_v60, %v1315_v40  ;;  %v1291_v27 = vadd.f32 %v2539_v3, %v1290_v6  ;;  %v1364_v4 = vsub.f32 1.0, %v1363_v19  ;;  %v1348_v20 = vmul.f32 %v2543_v21, %v4241_v18  ;;  %v4335_v62 = vpop.xlane.xlu2 %745  ;;  %v5170_v6 = vld [vmem:[#allocation5_spill] sm:$0xff] }
 0x1bd   : > { %v1358_v37 = vand.u32 2147483648, %v4241_v18  ;;  %2546 = vrcp.f32 %v4287_v0  ;;  %vm1368_vm8 = vweird.f32 %v2541_v7  ;;  %v1374_v30 = vor.u32 1.1754944e-38, %v1373_v34 }
 0x1be   : > { %1800 = vst.msk [vmem:[%s3688_s4 + $0x108] sm:$0xff] %vm230_vm0, %v1316_v42  ;;  %v1295_v54 = vsel %vm1294_vm6, %v2539_v3, %v1291_v27  ;;  %v1365_v24 = vmul.f32 %v2541_v7, %v1364_v4  ;;  %v1349_v48 = vsub.f32 1.0, %v1348_v20  ;;  %vm1352_vm9 = vweird.f32 %v4241_v18  ;;  %vm1369_vm11 = vmor %vm1367_vm5, %vm1368_vm8  ;;  %v4378_v11 = vpop.xlane.xlu0 %739 }
 0x1bf   : > { %v2545_v46 = vpop.eup %2544  ;;  %v1300_v32 = vsel %vm4278_vm3, %v1299_v47, %v1295_v54  ;;  %vm1353_vm10 = vweird.f32 %v2543_v21  ;;  %vm4317_vm12 = vcmp.eq.f32.partialorder %v1356_v38, 8.507059e+37  ;;  %v1359_v10 = vor.u32 1.1754944e-38, %v1358_v37  ;;  %v5173_v54 = vld [vmem:[#allocation9_spill] sm:$0xff] }
 0x1c0   : > { %v1301_v2 = vmul.f32 %v5161_v53, %v1300_v32  ;;  %v1366_v1 = vadd.f32 %v2541_v7, %v1365_v24  ;;  %v1350_v13 = vmul.f32 %v2543_v21, %v1349_v48  ;;  %v1333_v5 = vmul.f32 %v2545_v46, %v4263_v43  ;;  %vm1354_vm13 = vmor %vm1352_vm9, %vm1353_vm10 }
 0x1c1   : > { %v1341_v31 = vand.u32 2147483647, %v4263_v43  ;;  %2548 = vrcp.f32 %v4306_v29  ;;  %v1343_v23 = vand.u32 2147483648, %v4263_v43  ;;  %vm1338_vm14 = vweird.f32 %v2545_v46 }
 0x1c2   : > { %1799 = vst.msk [vmem:[%s3688_s4 + $0x100] sm:$0xff] %vm230_vm0, %v1301_v2  ;;  %v1370_v36 = vsel %vm1369_vm11, %v2541_v7, %v1366_v1  ;;  %v1351_v26 = vadd.f32 %v2543_v21, %v1350_v13  ;;  %v1334_v63 = vsub.f32 1.0, %v1333_v5  ;;  %v1416_v50 = vand.u32 2147483647, %v4287_v0  ;;  %v4359_v7 = vpop.xlane.xlu1 %742 }
 0x1c3   : > { %v2547_v22 = vpop.eup %2546  ;;  %v1375_v35 = vsel %vm4297_vm7, %v1374_v30, %v1370_v36  ;;  %2550 = vrcp.f32 %v4313_v28  ;;  %vm1337_vm15 = vweird.f32 %v4263_v43  ;;  %vm4340_vm1 = vcmp.eq.f32.partialorder %v1341_v31, 8.507059e+37 }
 0x1c4   : > { %v1376_v12 = vmul.f32 %v5164_v59, %v1375_v35  ;;  %v1355_v45 = vsel %vm1354_vm13, %v2543_v21, %v1351_v26  ;;  %v1335_v3 = vmul.f32 %v2545_v46, %v1334_v63  ;;  %v1408_v44 = vmul.f32 %v2547_v22, %v4287_v0  ;;  %vm1339_vm3 = vmor %vm1337_vm15, %vm1338_vm14  ;;  %v4385_v30 = vpop.xlane.xlu2 %754  ;;  %v5176_v26 = vld [vmem:[#allocation10_spill] sm:$0xff] }
 0x1c5   : > { %v1360_v15 = vsel %vm4317_vm12, %v1359_v10, %v1355_v45  ;;  %v1418_v61 = vand.u32 2147483648, %v4287_v0  ;;  %vm1412_vm2 = vweird.f32 %v4287_v0  ;;  %v1344_v57 = vor.u32 1.1754944e-38, %v1343_v23  ;;  %v5179_v45 = vld [vmem:[#allocation8_spill] sm:$0xff] }
 0x1c6   : > { %1804 = vst.msk [vmem:[%s3688_s4 + $0x128] sm:$0xff] %vm230_vm0, %v1376_v12  ;;  %v1361_v58 = vmul.f32 %v5167_v52, %v1360_v15  ;;  %v1336_v8 = vadd.f32 %v2545_v46, %v1335_v3  ;;  %v1409_v25 = vsub.f32 1.0, %v1408_v44  ;;  %vm4350_vm4 = vcmp.eq.f32.partialorder %v1416_v50, 8.507059e+37 }
 0x1c7   : > { %v2549_v55 = vpop.eup %2548  ;;  %v1401_v51 = vand.u32 2147483647, %v4306_v29  ;;  %2552 = vrcp.f32 %v4335_v62  ;;  %vm1413_vm5 = vweird.f32 %v2547_v22  ;;  %v1419_v49 = vor.u32 1.1754944e-38, %v1418_v61 }
 0x1c8   : > { %1803 = vst.msk [vmem:[%s3688_s4 + $0x120] sm:$0xff] %vm230_vm0, %v1361_v58  ;;  %v1340_v16 = vsel %vm1339_vm3, %v2545_v46, %v1336_v8  ;;  %v1410_v41 = vmul.f32 %v2547_v22, %v1409_v25  ;;  %v1393_v56 = vmul.f32 %v2549_v55, %v4306_v29  ;;  %vm1397_vm6 = vweird.f32 %v4306_v29  ;;  %vm1414_vm7 = vmor %vm1412_vm2, %vm1413_vm5 }
 0x1c9   : > { %v2551_v33 = vpop.eup %2550  ;;  %v1345_v39 = vsel %vm4340_vm1, %v1344_v57, %v1340_v16  ;;  %v1403_v17 = vand.u32 2147483648, %v4306_v29  ;;  %vm4369_vm8 = vcmp.eq.f32.partialorder %v1401_v51, 8.507059e+37  ;;  %v1386_v60 = vand.u32 2147483647, %v4313_v28 }
 0x1ca   : > { %v1346_v19 = vmul.f32 %v5170_v6, %v1345_v39  ;;  %v1411_v21 = vadd.f32 %v2547_v22, %v1410_v41  ;;  %v1394_v40 = vsub.f32 1.0, %v1393_v56  ;;  %v1378_v47 = vmul.f32 %v2551_v33, %v4313_v28  ;;  %v4407_v50 = vpop.xlane.xlu1 %751  ;;  %v5182_v41 = vld [vmem:[#allocation13_spill] sm:$0xff] }
 0x1cb   : > { %v1388_v42 = vand.u32 2147483648, %v4313_v28  ;;  %2554 = vrcp.f32 %v4359_v7  ;;  %vm1398_vm9 = vweird.f32 %v2549_v55  ;;  %v1404_v37 = vor.u32 1.1754944e-38, %v1403_v17 }
 0x1cc   : > { %1802 = vst.msk [vmem:[%s3688_s4 + $0x118] sm:$0xff] %vm230_vm0, %v1346_v19  ;;  %v1415_v27 = vsel %vm1414_vm7, %v2547_v22, %v1411_v21  ;;  %v1395_v4 = vmul.f32 %v2549_v55, %v1394_v40  ;;  %v1379_v20 = vsub.f32 1.0, %v1378_v47  ;;  %vm1382_vm10 = vweird.f32 %v4313_v28  ;;  %vm1399_vm12 = vmor %vm1397_vm6, %vm1398_vm9  ;;  %v4450_v34 = vpop.xlane.xlu2 %763 }
 0x1cd   : > { %v2553_v0 = vpop.eup %2552  ;;  %v1420_v38 = vsel %vm4350_vm4, %v1419_v49, %v1415_v27  ;;  %vm1383_vm11 = vweird.f32 %v2551_v33  ;;  %vm4389_vm13 = vcmp.eq.f32.partialorder %v1386_v60, 8.507059e+37  ;;  %v1389_v2 = vor.u32 1.1754944e-38, %v1388_v42  ;;  %v5185_v27 = vld [vmem:[#allocation14_spill] sm:$0xff] }
 0x1ce   : > { %v1421_v24 = vmul.f32 %v5173_v54, %v1420_v38  ;;  %v1396_v48 = vadd.f32 %v2549_v55, %v1395_v4  ;;  %v1380_v46 = vmul.f32 %v2551_v33, %v1379_v20  ;;  %v1453_v32 = vmul.f32 %v2553_v0, %v4335_v62  ;;  %vm1384_vm14 = vmor %vm1382_vm10, %vm1383_vm11 }
 0x1cf   : > { %v1461_v1 = vand.u32 2147483647, %v4335_v62  ;;  %2556 = vrcp.f32 %v4378_v11  ;;  %v1463_v10 = vand.u32 2147483648, %v4335_v62  ;;  %vm1458_vm15 = vweird.f32 %v2553_v0 }
 0x1d0   : > { %1807 = vst.msk [vmem:[%s3688_s4 + $0x140] sm:$0xff] %vm230_vm0, %v1421_v24  ;;  %v1400_v13 = vsel %vm1399_vm12, %v2549_v55, %v1396_v48  ;;  %v1381_v5 = vadd.f32 %v2551_v33, %v1380_v46  ;;  %v1454_v14 = vsub.f32 1.0, %v1453_v32  ;;  %v1446_v36 = vand.u32 2147483647, %v4359_v7  ;;  %v4431_v55 = vpop.xlane.xlu0 %748 }
 0x1d1   : > { %v2555_v31 = vpop.eup %2554  ;;  %v1405_v29 = vsel %vm4369_vm8, %v1404_v37, %v1400_v13  ;;  %2558 = vrcp.f32 %v4385_v30  ;;  %vm1457_vm1 = vweird.f32 %v4335_v62  ;;  %vm4412_vm2 = vcmp.eq.f32.partialorder %v1461_v1, 8.507059e+37 }
 0x1d2   : > { %v1406_v63 = vmul.f32 %v5176_v26, %v1405_v29  ;;  %v1385_v23 = vsel %vm1384_vm14, %v2551_v33, %v1381_v5  ;;  %v1455_v22 = vmul.f32 %v2553_v0, %v1454_v14  ;;  %v1438_v35 = vmul.f32 %v2555_v31, %v4359_v7  ;;  %vm1459_vm4 = vmor %vm1457_vm1, %vm1458_vm15  ;;  %v4457_v37 = vpop.xlane.xlu1 %760  ;;  %v5188_v5 = vld [vmem:[#allocation11_spill] sm:$0xff] }
 0x1d3   : > { %v1390_v59 = vsel %vm4389_vm13, %v1389_v2, %v1385_v23  ;;  %v1448_v12 = vand.u32 2147483648, %v4359_v7  ;;  %vm1442_vm3 = vweird.f32 %v4359_v7  ;;  %v1464_v61 = vor.u32 1.1754944e-38, %v1463_v10  ;;  %v5191_v23 = vld [vmem:[#allocation16_spill] sm:$0xff] }
 0x1d4   : > { %1806 = vst.msk [vmem:[%s3688_s4 + $0x138] sm:$0xff] %vm230_vm0, %v1406_v63  ;;  %v1391_v3 = vmul.f32 %v5179_v45, %v1390_v59  ;;  %v1456_v44 = vadd.f32 %v2553_v0, %v1455_v22  ;;  %v1439_v15 = vsub.f32 1.0, %v1438_v35  ;;  %vm4422_vm5 = vcmp.eq.f32.partialorder %v1446_v36, 8.507059e+37 }
 0x1d5   : > { %v2557_v18 = vpop.eup %2556  ;;  %v1431_v52 = vand.u32 2147483647, %v4378_v11  ;;  %2560 = vrcp.f32 %v4407_v50  ;;  %vm1443_vm6 = vweird.f32 %v2555_v31  ;;  %v1449_v51 = vor.u32 1.1754944e-38, %v1448_v12 }
 0x1d6   : > { %1805 = vst.msk [vmem:[%s3688_s4 + $0x130] sm:$0xff] %vm230_vm0, %v1391_v3  ;;  %v1460_v58 = vsel %vm1459_vm4, %v2553_v0, %v1456_v44  ;;  %v1440_v8 = vmul.f32 %v2555_v31, %v1439_v15  ;;  %v1423_v25 = vmul.f32 %v2557_v18, %v4378_v11  ;;  %vm1427_vm7 = vweird.f32 %v4378_v11  ;;  %vm1444_vm8 = vmor %vm1442_vm3, %vm1443_vm6 }
 0x1d7   : > { %v2559_v57 = vpop.eup %2558  ;;  %v1465_v43 = vsel %vm4412_vm2, %v1464_v61, %v1460_v58  ;;  %v1433_v16 = vand.u32 2147483648, %v4378_v11  ;;  %vm4441_vm9 = vcmp.eq.f32.partialorder %v1431_v52, 8.507059e+37  ;;  %v1506_v6 = vand.u32 2147483647, %v4385_v30 }
 0x1d8   : > { %v1466_v56 = vmul.f32 %v5182_v41, %v1465_v43  ;;  %v1441_v33 = vadd.f32 %v2555_v31, %v1440_v8  ;;  %v1424_v39 = vsub.f32 1.0, %v1423_v25  ;;  %v1498_v49 = vmul.f32 %v2559_v57, %v4385_v30  ;;  %v4479_v36 = vpop.xlane.xlu0 %757  ;;  %v5194_v8 = vld [vmem:[#allocation17_spill] sm:$0xff] }
 0x1d9   : > { %v1508_v19 = vand.u32 2147483648, %v4385_v30  ;;  %2562 = vrcp.f32 %v4431_v55  ;;  %vm1428_vm10 = vweird.f32 %v2557_v18  ;;  %v1434_v42 = vor.u32 1.1754944e-38, %v1433_v16 }
 0x1da   : > { %1810 = vst.msk [vmem:[%s3688_s4 + $0x158] sm:$0xff] %vm230_vm0, %v1466_v56  ;;  %v1445_v21 = vsel %vm1444_vm8, %v2555_v31, %v1441_v33  ;;  %v1425_v40 = vmul.f32 %v2557_v18, %v1424_v39  ;;  %v1499_v47 = vsub.f32 1.0, %v1498_v49  ;;  %vm1502_vm11 = vweird.f32 %v4385_v30  ;;  %vm1429_vm13 = vmor %vm1427_vm7, %vm1428_vm10  ;;  %v4511_v16 = vpop.xlane.xlu1 %769 }
 0x1db   : > { %v2561_v7 = vpop.eup %2560  ;;  %v1450_v60 = vsel %vm4422_vm5, %v1449_v51, %v1445_v21  ;;  %vm1503_vm12 = vweird.f32 %v2559_v57  ;;  %vm4461_vm14 = vcmp.eq.f32.partialorder %v1506_v6, 8.507059e+37  ;;  %v1509_v24 = vor.u32 1.1754944e-38, %v1508_v19  ;;  %v5197_v21 = vld [vmem:[#allocation12_spill] sm:$0xff] }
 0x1dc   : > { %v1451_v4 = vmul.f32 %v5185_v27, %v1450_v60  ;;  %v1426_v20 = vadd.f32 %v2557_v18, %v1425_v40  ;;  %v1500_v0 = vmul.f32 %v2559_v57, %v1499_v47  ;;  %v1483_v38 = vmul.f32 %v2561_v7, %v4407_v50  ;;  %vm1504_vm15 = vmor %vm1502_vm11, %vm1503_vm12 }
 0x1dd   : > { %v1491_v48 = vand.u32 2147483647, %v4407_v50  ;;  %2564 = vrcp.f32 %v4450_v34  ;;  %v1493_v2 = vand.u32 2147483648, %v4407_v50  ;;  %vm1488_vm1 = vweird.f32 %v2561_v7 }
 0x1de   : > { %1809 = vst.msk [vmem:[%s3688_s4 + $0x150] sm:$0xff] %vm230_vm0, %v1451_v4  ;;  %v1430_v46 = vsel %vm1429_vm13, %v2557_v18, %v1426_v20  ;;  %v1501_v32 = vadd.f32 %v2559_v57, %v1500_v0  ;;  %v1484_v53 = vsub.f32 1.0, %v1483_v38  ;;  %v1476_v13 = vand.u32 2147483647, %v4431_v55  ;;  %v4503_v18 = vpop.xlane.xlu2 %772 }
 0x1df   : > { %v2563_v1 = vpop.eup %2562  ;;  %v1435_v11 = vsel %vm4441_vm9, %v1434_v42, %v1430_v46  ;;  %2566 = vrcp.f32 %v4457_v37  ;;  %vm1487_vm2 = vweird.f32 %v4407_v50  ;;  %vm4484_vm3 = vcmp.eq.f32.partialorder %v1491_v48, 8.507059e+37 }
 0x1e0   : > { %v1436_v14 = vmul.f32 %v5188_v5, %v1435_v11  ;;  %v1505_v10 = vsel %vm1504_vm15, %v2559_v57, %v1501_v32  ;;  %v1485_v31 = vmul.f32 %v2561_v7, %v1484_v53  ;;  %v1468_v29 = vmul.f32 %v2563_v1, %v4431_v55  ;;  %vm1489_vm5 = vmor %vm1487_vm2, %vm1488_vm1  ;;  %v4529_v42 = vpop.xlane.xlu0 %766  ;;  %v5200_v32 = vld [vmem:[#allocation19_spill] sm:$0xff] }
 0x1e1   : > { %v1510_v26 = vsel %vm4461_vm14, %v1509_v24, %v1505_v10  ;;  %v1478_v63 = vand.u32 2147483648, %v4431_v55  ;;  %vm1472_vm4 = vweird.f32 %v4431_v55  ;;  %v1494_v12 = vor.u32 1.1754944e-38, %v1493_v2  ;;  %v5203_v10 = vld [vmem:[#allocation20_spill] sm:$0xff] }
 0x1e2   : > { %1808 = vst.msk [vmem:[%s3688_s4 + $0x148] sm:$0xff] %vm230_vm0, %v1436_v14  ;;  %v1511_v22 = vmul.f32 %v5191_v23, %v1510_v26  ;;  %v1486_v35 = vadd.f32 %v2561_v7, %v1485_v31  ;;  %v1469_v59 = vsub.f32 1.0, %v1468_v29  ;;  %vm4494_vm6 = vcmp.eq.f32.partialorder %v1476_v13, 8.507059e+37  ;;  %v4565_v30 = vpop.xlane.xlu1 %778 }
 0x1e3   : > { %v2565_v28 = vpop.eup %2564  ;;  %v1551_v45 = vand.u32 2147483647, %v4450_v34  ;;  %2568 = vrcp.f32 %v4479_v36  ;;  %vm1473_vm7 = vweird.f32 %v2563_v1  ;;  %v1479_v52 = vor.u32 1.1754944e-38, %v1478_v63 }
 0x1e4   : > { %1813 = vst.msk [vmem:[%s3688_s4 + $0x170] sm:$0xff] %vm230_vm0, %v1511_v22  ;;  %v1490_v3 = vsel %vm1489_vm5, %v2561_v7, %v1486_v35  ;;  %v1470_v44 = vmul.f32 %v2563_v1, %v1469_v59  ;;  %v1543_v15 = vmul.f32 %v2565_v28, %v4450_v34  ;;  %vm1547_vm8 = vweird.f32 %v4450_v34  ;;  %vm1474_vm9 = vmor %vm1472_vm4, %vm1473_vm7 }
 0x1e5   : > { %v2567_v61 = vpop.eup %2566  ;;  %v1495_v62 = vsel %vm4484_vm3, %v1494_v12, %v1490_v3  ;;  %v1553_v58 = vand.u32 2147483648, %v4450_v34  ;;  %vm4515_vm10 = vcmp.eq.f32.partialorder %v1551_v45, 8.507059e+37  ;;  %v1536_v56 = vand.u32 2147483647, %v4457_v37 }
 0x1e6   : > { %v1496_v25 = vmul.f32 %v5194_v8, %v1495_v62  ;;  %v1471_v57 = vadd.f32 %v2563_v1, %v1470_v44  ;;  %v1544_v43 = vsub.f32 1.0, %v1543_v15  ;;  %v1528_v51 = vmul.f32 %v2567_v61, %v4457_v37  ;;  %v4551_v13 = vpop.xlane.xlu2 %781  ;;  %v5206_v44 = vld [vmem:[#allocation15_spill] sm:$0xff] }
 0x1e7   : > { %v1538_v33 = vand.u32 2147483648, %v4457_v37  ;;  %2570 = vrcp.f32 %v4503_v18  ;;  %vm1548_vm11 = vweird.f32 %v2565_v28  ;;  %v1554_v19 = vor.u32 1.1754944e-38, %v1553_v58 }
 0x1e8   : > { %1812 = vst.msk [vmem:[%s3688_s4 + $0x168] sm:$0xff] %vm230_vm0, %v1496_v25  ;;  %v1475_v39 = vsel %vm1474_vm9, %v2563_v1, %v1471_v57  ;;  %v1545_v49 = vmul.f32 %v2565_v28, %v1544_v43  ;;  %v1529_v17 = vsub.f32 1.0, %v1528_v51  ;;  %vm1532_vm12 = vweird.f32 %v4457_v37  ;;  %vm1549_vm14 = vmor %vm1547_vm8, %vm1548_vm11  ;;  %v4583_v58 = vpop.xlane.xlu0 %775 }
 0x1e9   : > { %v2569_v6 = vpop.eup %2568  ;;  %v1480_v55 = vsel %vm4494_vm6, %v1479_v52, %v1475_v39  ;;  %vm1533_vm13 = vweird.f32 %v2567_v61  ;;  %vm4533_vm15 = vcmp.eq.f32.partialorder %v1536_v56, 8.507059e+37  ;;  %v1539_v4 = vor.u32 1.1754944e-38, %v1538_v33  ;;  %v5209_v39 = vld [vmem:[#allocation22_spill] sm:$0xff] }
 0x1ea   : > { %v1481_v40 = vmul.f32 %v5197_v21, %v1480_v55  ;;  %v1546_v47 = vadd.f32 %v2565_v28, %v1545_v49  ;;  %v1530_v7 = vmul.f32 %v2567_v61, %v1529_v17  ;;  %v1513_v60 = vmul.f32 %v2569_v6, %v4479_v36  ;;  %vm1534_vm1 = vmor %vm1532_vm12, %vm1533_vm13 }
 0x1eb   : > { %v1521_v20 = vand.u32 2147483647, %v4479_v36  ;;  %2572 = vrcp.f32 %v4511_v16  ;;  %v1523_v24 = vand.u32 2147483648, %v4479_v36  ;;  %vm1518_vm2 = vweird.f32 %v2569_v6 }
 0x1ec   : > { %1811 = vst.msk [vmem:[%s3688_s4 + $0x160] sm:$0xff] %vm230_vm0, %v1481_v40  ;;  %v1550_v0 = vsel %vm1549_vm14, %v2565_v28, %v1546_v47  ;;  %v1531_v38 = vadd.f32 %v2567_v61, %v1530_v7  ;;  %v1514_v54 = vsub.f32 1.0, %v1513_v60  ;;  %v1596_v46 = vand.u32 2147483647, %v4503_v18 }
 0x1ed   : > { %v2571_v48 = vpop.eup %2570  ;;  %v1555_v34 = vsel %vm4515_vm10, %v1554_v19, %v1550_v0  ;;  %2574 = vrcp.f32 %v4529_v42  ;;  %vm1517_vm3 = vweird.f32 %v4479_v36  ;;  %vm4556_vm4 = vcmp.eq.f32.partialorder %v1521_v20, 8.507059e+37  ;;  %v4614_v20 = vpop.xlane.xlu1 %787 }
 0x1ee   : > { %v1556_v53 = vmul.f32 %v5200_v32, %v1555_v34  ;;  %v1535_v2 = vsel %vm1534_vm1, %v2567_v61, %v1531_v38  ;;  %v1515_v1 = vmul.f32 %v2569_v6, %v1514_v54  ;;  %v1588_v11 = vmul.f32 %v2571_v48, %v4503_v18  ;;  %vm1519_vm6 = vmor %vm1517_vm3, %vm1518_vm2  ;;  %v4601_v19 = vpop.xlane.xlu2 %790  ;;  %v5212_v54 = vld [vmem:[#allocation23_spill] sm:$0xff] }
 0x1ef   : > { %v1540_v5 = vsel %vm4533_vm15, %v1539_v4, %v1535_v2  ;;  %v1598_v14 = vand.u32 2147483648, %v4503_v18  ;;  %vm1592_vm5 = vweird.f32 %v4503_v18  ;;  %v1524_v36 = vor.u32 1.1754944e-38, %v1523_v24 }
 0x1f0   : > { %1816 = vst.msk [vmem:[%s3688_s4 + $0x188] sm:$0xff] %vm230_vm0, %v1556_v53  ;;  %v1541_v31 = vmul.f32 %v5203_v10, %v1540_v5  ;;  %v1516_v29 = vadd.f32 %v2569_v6, %v1515_v1  ;;  %v1589_v26 = vsub.f32 1.0, %v1588_v11  ;;  %vm4568_vm7 = vcmp.eq.f32.partialorder %v1596_v46, 8.507059e+37  ;;  %v5213_v53 = vld [vmem:[#allocation18_spill] sm:$0xff]  ;;  %v4632_v5 = vpop.xlane.xlu0 %784 }
 0x1f1   : > { %v2573_v63 = vpop.eup %2572  ;;  %v1581_v22 = vand.u32 2147483647, %v4511_v16  ;;  %2576 = vrcp.f32 %v4551_v13  ;;  %vm1593_vm8 = vweird.f32 %v2571_v48  ;;  %v1599_v45 = vor.u32 1.1754944e-38, %v1598_v14 }
 0x1f2   : > { %1815 = vst.msk [vmem:[%s3688_s4 + $0x180] sm:$0xff] %vm230_vm0, %v1541_v31  ;;  %v1520_v35 = vsel %vm1519_vm6, %v2569_v6, %v1516_v29  ;;  %v1590_v59 = vmul.f32 %v2571_v48, %v1589_v26  ;;  %v1573_v28 = vmul.f32 %v2573_v63, %v4511_v16  ;;  %vm1577_vm9 = vweird.f32 %v4511_v16  ;;  %vm1594_vm10 = vmor %vm1592_vm5, %vm1593_vm8 }
 0x1f3   : > { %v2575_v12 = vpop.eup %2574  ;;  %v1525_v50 = vsel %vm4556_vm4, %v1524_v36, %v1520_v35  ;;  %v1583_v3 = vand.u32 2147483648, %v4511_v16  ;;  %vm4587_vm11 = vcmp.eq.f32.partialorder %v1581_v22, 8.507059e+37  ;;  %v1566_v25 = vand.u32 2147483647, %v4529_v42  ;;  %v5216_v35 = vld [vmem:[#allocation25_spill] sm:$0xff] }
 0x1f4   : > { %v1526_v15 = vmul.f32 %v5206_v44, %v1525_v50  ;;  %v1591_v61 = vadd.f32 %v2571_v48, %v1590_v59  ;;  %v1574_v62 = vsub.f32 1.0, %v1573_v28  ;;  %v1558_v52 = vmul.f32 %v2575_v12, %v4529_v42 }
 0x1f5   : > { %v1568_v57 = vand.u32 2147483648, %v4529_v42  ;;  %2578 = vrcp.f32 %v4565_v30  ;;  %vm1578_vm12 = vweird.f32 %v2573_v63  ;;  %v1584_v33 = vor.u32 1.1754944e-38, %v1583_v3 }
 0x1f6   : > { %1814 = vst.msk [vmem:[%s3688_s4 + $0x178] sm:$0xff] %vm230_vm0, %v1526_v15  ;;  %v1595_v43 = vsel %vm1594_vm10, %v2571_v48, %v1591_v61  ;;  %v1575_v51 = vmul.f32 %v2573_v63, %v1574_v62  ;;  %v1559_v41 = vsub.f32 1.0, %v1558_v52  ;;  %vm1562_vm13 = vweird.f32 %v4529_v42  ;;  %vm1579_vm15 = vmor %vm1577_vm9, %vm1578_vm12  ;;  %v4656_v62 = vpop.xlane.xlu2 %799  ;;  %v4658_v52 = vpop.xlane.xlu1 %796 }
 0x1f7   : > { %v2577_v56 = vpop.eup %2576  ;;  %v1600_v18 = vsel %vm4568_vm7, %v1599_v45, %v1595_v43  ;;  %vm1563_vm14 = vweird.f32 %v2575_v12  ;;  %vm4605_vm1 = vcmp.eq.f32.partialorder %v1566_v25, 8.507059e+37  ;;  %v1569_v40 = vor.u32 1.1754944e-38, %v1568_v57  ;;  %v5219_v43 = vld [vmem:[#allocation26_spill] sm:$0xff] }
 0x1f8   : > { %v1601_v49 = vmul.f32 %v5209_v39, %v1600_v18  ;;  %v1576_v17 = vadd.f32 %v2573_v63, %v1575_v51  ;;  %v1560_v6 = vmul.f32 %v2575_v12, %v1559_v41  ;;  %v1633_v55 = vmul.f32 %v2577_v56, %v4551_v13  ;;  %vm1564_vm2 = vmor %vm1562_vm13, %vm1563_vm14  ;;  %v4679_v21 = vpop.xlane.xlu0 %793 }
 0x1f9   : > { %v1641_v47 = vand.u32 2147483647, %v4551_v13  ;;  %2580 = vrcp.f32 %v4583_v58  ;;  %v1643_v4 = vand.u32 2147483648, %v4551_v13  ;;  %vm1638_vm3 = vweird.f32 %v2577_v56 }
 0x1fa   : > { %1819 = vst.msk [vmem:[%s3688_s4 + $0x1a0] sm:$0xff] %vm230_vm0, %v1601_v49  ;;  %v1580_v7 = vsel %vm1579_vm15, %v2573_v63, %v1576_v17  ;;  %v1561_v60 = vadd.f32 %v2575_v12, %v1560_v6  ;;  %v1634_v27 = vsub.f32 1.0, %v1633_v55  ;;  %v1626_v38 = vand.u32 2147483647, %v4565_v30 }
 0x1fb   : > { %v2579_v16 = vpop.eup %2578  ;;  %v1585_v0 = vsel %vm4587_vm11, %v1584_v33, %v1580_v7  ;;  %2582 = vrcp.f32 %v4601_v19  ;;  %vm1637_vm4 = vweird.f32 %v4551_v13  ;;  %v1628_v42 = vand.u32 2147483648, %v4565_v30  ;;  %v5232_v33 = vld [vmem:[#allocation41_spill] sm:$0xff] }
 0x1fc   : > { %v1586_v24 = vmul.f32 %v5212_v54, %v1585_v0  ;;  %v1565_v48 = vsel %vm1564_vm2, %v2575_v12, %v1561_v60  ;;  %v1635_v34 = vmul.f32 %v2577_v56, %v1634_v27  ;;  %v1618_v46 = vmul.f32 %v2579_v16, %v4565_v30  ;;  %vm1639_vm6 = vmor %vm1637_vm4, %vm1638_vm3  ;;  %v5223_v54 = vld [vmem:[#allocation38_spill] sm:$0xff] }
 0x1fd   : > { %v1570_v32 = vsel %vm4605_vm1, %v1569_v40, %v1565_v48  ;;  %vm1642_vm5 = vcmp.eq.f32.partialorder %v1641_v47, 8.507059e+37  ;;  %v1644_v14 = vor.u32 1.1754944e-38, %v1643_v4  ;;  %vm1622_vm7 = vweird.f32 %v4565_v30  ;;  %v5222_v47 = vld [vmem:[#allocation21_spill] sm:$0xff] }
 0x1fe   : > { %1818 = vst.msk [vmem:[%s3688_s4 + $0x198] sm:$0xff] %vm230_vm0, %v1586_v24  ;;  %v1571_v2 = vmul.f32 %v5213_v53, %v1570_v32  ;;  %v1636_v1 = vadd.f32 %v2577_v56, %v1635_v34  ;;  %v1619_v11 = vsub.f32 1.0, %v1618_v46  ;;  %vm4636_vm8 = vcmp.eq.f32.partialorder %v1626_v38, 8.507059e+37 }
 0x1ff   : > { %v2581_v37 = vpop.eup %2580  ;;  %2584 = vrcp.f32 %v4614_v20  ;;  %vm1623_vm9 = vweird.f32 %v2579_v16  ;;  %v1629_v36 = vor.u32 1.1754944e-38, %v1628_v42  ;;  %v1611_v23 = vand.u32 2147483647, %v4583_v58 }
 0x200   : > { %1817 = vst.msk [vmem:[%s3688_s4 + $0x190] sm:$0xff] %vm230_vm0, %v1571_v2  ;;  %v1640_v13 = vsel %vm1639_vm6, %v2577_v56, %v1636_v1  ;;  %v1620_v31 = vmul.f32 %v2579_v16, %v1619_v11  ;;  %v1603_v29 = vmul.f32 %v2581_v37, %v4583_v58  ;;  %v1613_v22 = vand.u32 2147483648, %v4583_v58  ;;  %vm1624_vm10 = vmor %vm1622_vm7, %vm1623_vm9  ;;  %v4702_v1 = vpop.xlane.xlu1 %805 }
 0x201   : > { %v2583_v26 = vpop.eup %2582  ;;  %v1645_v63 = vsel %vm1642_vm5, %v1644_v14, %v1640_v13  ;;  %vm1607_vm11 = vweird.f32 %v4583_v58  ;;  %v1686_v45 = vand.u32 2147483647, %v4601_v19  ;;  %v1688_v3 = vand.u32 2147483648, %v4601_v19  ;;  %v5226_v13 = vld [vmem:[#allocation39_spill] sm:$0xff] }
 0x202   : > { %v1646_v59 = vmul.f32 %v5216_v35, %v1645_v63  ;;  %v1621_v28 = vadd.f32 %v2579_v16, %v1620_v31  ;;  %v1604_v12 = vsub.f32 1.0, %v1603_v29  ;;  %v1678_v50 = vmul.f32 %v2583_v26, %v4601_v19 }
 0x203   : > { %2586 = vrcp.f32 %v4632_v5  ;;  %vm1608_vm12 = vweird.f32 %v2581_v37  ;;  %vm4662_vm13 = vcmp.eq.f32.partialorder %v1611_v23, 8.507059e+37  ;;  %v1614_v57 = vor.u32 1.1754944e-38, %v1613_v22 }
 0x204   : > { %1822 = vst.msk [vmem:[%s3688_s4 + $0x1b8] sm:$0xff] %vm230_vm0, %v1646_v59  ;;  %v1625_v44 = vsel %vm1624_vm10, %v2579_v16, %v1621_v28  ;;  %v1605_v15 = vmul.f32 %v2581_v37, %v1604_v12  ;;  %v1679_v61 = vsub.f32 1.0, %v1678_v50  ;;  %vm1683_vm14 = vweird.f32 %v2583_v26  ;;  %vm1609_vm15 = vmor %vm1607_vm11, %vm1608_vm12  ;;  %v4719_v12 = vpop.xlane.xlu0 %802 }
 0x205   : > { %v2585_v30 = vpop.eup %2584  ;;  %v1630_v8 = vsel %vm4636_vm8, %v1629_v36, %v1625_v44  ;;  %vm1682_vm1 = vweird.f32 %v4601_v19  ;;  %vm4671_vm2 = vcmp.eq.f32.partialorder %v1686_v45, 8.507059e+37  ;;  %v1689_v39 = vor.u32 1.1754944e-38, %v1688_v3  ;;  %v5229_v3 = vld [vmem:[#allocation24_spill] sm:$0xff] }
 0x206   : > { %v1631_v51 = vmul.f32 %v5219_v43, %v1630_v8  ;;  %v1606_v41 = vadd.f32 %v2581_v37, %v1605_v15  ;;  %v1680_v56 = vmul.f32 %v2583_v26, %v1679_v61  ;;  %v1663_v18 = vmul.f32 %v2585_v30, %v4614_v20  ;;  %vm1684_vm3 = vmor %vm1682_vm1, %vm1683_vm14 }
 0x207   : > { %2588 = vrcp.f32 %v4656_v62  ;;  %v1671_v55 = vand.u32 2147483647, %v4614_v20  ;;  %vm1668_vm4 = vweird.f32 %v2585_v30  ;;  %v1673_v40 = vand.u32 2147483648, %v4614_v20 }
 0x208   : > { %1821 = vst.msk [vmem:[%s3688_s4 + $0x1b0] sm:$0xff] %vm230_vm0, %v1631_v51  ;;  %v1610_v49 = vsel %vm1609_vm15, %v2581_v37, %v1606_v41  ;;  %v1681_v17 = vadd.f32 %v2583_v26, %v1680_v56  ;;  %v1664_v6 = vsub.f32 1.0, %v1663_v18  ;;  %2590 = vrcp.f32 %v4658_v52 }
 0x209   : > { %v2587_v58 = vpop.eup %2586  ;;  %v1615_v19 = vsel %vm4662_vm13, %v1614_v57, %v1610_v49  ;;  %v1656_v0 = vand.u32 2147483647, %v4632_v5  ;;  %v1658_v38 = vand.u32 2147483648, %v4632_v5  ;;  %vm1667_vm5 = vweird.f32 %v4614_v20 }
 0x20a   : > { %v1616_v7 = vmul.f32 %v5222_v47, %v1615_v19  ;;  %v1685_v60 = vsel %vm1684_vm3, %v2583_v26, %v1681_v17  ;;  %v1665_v27 = vmul.f32 %v2585_v30, %v1664_v6  ;;  %v1648_v4 = vmul.f32 %v2587_v58, %v4632_v5  ;;  %vm1669_vm6 = vmor %vm1667_vm5, %vm1668_vm4 }
 0x20b   : > { %v1690_v16 = vsel %vm4671_vm2, %v1689_v39, %v1685_v60  ;;  %vm1672_vm7 = vcmp.eq.f32.partialorder %v1671_v55, 8.507059e+37  ;;  %v1674_v32 = vor.u32 1.1754944e-38, %v1673_v40  ;;  %vm1652_vm8 = vweird.f32 %v4632_v5 }
 0x20c   : > { %1820 = vst.msk [vmem:[%s3688_s4 + $0x1a8] sm:$0xff] %vm230_vm0, %v1616_v7  ;;  %v1691_v24 = vmul.f32 %v5223_v54, %v1690_v16  ;;  %v1666_v48 = vadd.f32 %v2585_v30, %v1665_v27  ;;  %v1649_v34 = vsub.f32 1.0, %v1648_v4  ;;  %2592 = vrcp.f32 %v4679_v21 }
 0x20d   : > { %v2589_v46 = vpop.eup %2588  ;;  %vm1653_vm9 = vweird.f32 %v2587_v58  ;;  %vm4704_vm10 = vcmp.eq.f32.partialorder %v1656_v0, 8.507059e+37  ;;  %v1659_v14 = vor.u32 1.1754944e-38, %v1658_v38  ;;  %v1731_v10 = vand.u32 2147483647, %v4656_v62 }
 0x20e   : > { %1825 = vst.msk [vmem:[%s3688_s4 + $0x1d0] sm:$0xff] %vm230_vm0, %v1691_v24  ;;  %v1670_v42 = vsel %vm1669_vm6, %v2585_v30, %v1666_v48  ;;  %v1650_v53 = vmul.f32 %v2587_v58, %v1649_v34  ;;  %v1723_v2 = vmul.f32 %v2589_v46, %v4656_v62  ;;  %v2591_v20 = vpop.eup %2590  ;;  %vm1654_vm11 = vmor %vm1652_vm8, %vm1653_vm9  ;;  %v1733_v36 = vand.u32 2147483648, %v4656_v62  ;;  %v5234_v24 = vld [vmem:[#allocation37_spill] sm:$0xff] }
 0x20f   : > { %v1675_v11 = vsel %vm1672_vm7, %v1674_v32, %v1670_v42  ;;  %v1708_v63 = vmul.f32 %v2591_v20, %v4658_v52  ;;  %v1716_v23 = vand.u32 2147483647, %v4658_v52  ;;  %v1718_v22 = vand.u32 2147483648, %v4658_v52 }
 0x210   : > { %v1676_v31 = vmul.f32 %v5226_v13, %v1675_v11  ;;  %v1651_v29 = vadd.f32 %v2587_v58, %v1650_v53  ;;  %v1724_v26 = vsub.f32 1.0, %v1723_v2  ;;  %2594 = vrcp.f32 %v4702_v1  ;;  %v5235_v13 = vld [vmem:[#allocation40_spill] sm:$0xff] }
 0x211   : > { %vm1728_vm12 = vweird.f32 %v2589_v46  ;;  %v1709_v28 = vsub.f32 1.0, %v1708_v63  ;;  %vm1727_vm13 = vweird.f32 %v4656_v62  ;;  %vm4724_vm14 = vcmp.eq.f32.partialorder %v1731_v10, 8.507059e+37 }
 0x212   : > { %1824 = vst.msk [vmem:[%s3688_s4 + $0x1c8] sm:$0xff] %vm230_vm0, %v1676_v31  ;;  %v1655_v35 = vsel %vm1654_vm11, %v2587_v58, %v1651_v29  ;;  %v1725_v59 = vmul.f32 %v2589_v46, %v1724_v26  ;;  %v2593_v50 = vpop.eup %2592  ;;  %vm1713_vm15 = vweird.f32 %v2591_v20  ;;  %vm1729_vm1 = vmor %vm1727_vm13, %vm1728_vm12  ;;  %v1734_v8 = vor.u32 1.1754944e-38, %v1733_v36  ;;  %v5233_v58 = vld [vmem:[#allocation42_spill] sm:$0xff] }
 0x213   : > { %v1660_v5 = vsel %vm4704_vm10, %v1659_v14, %v1655_v35  ;;  %v1710_v61 = vmul.f32 %v2591_v20, %v1709_v28  ;;  %v1693_v30 = vmul.f32 %v2593_v50, %v4679_v21  ;;  %vm1712_vm2 = vweird.f32 %v4658_v52 }
 0x214   : > { %v1661_v44 = vmul.f32 %v5229_v3, %v1660_v5  ;;  %v1726_v15 = vadd.f32 %v2589_v46, %v1725_v59  ;;  %vm4731_vm3 = vcmp.eq.f32.partialorder %v1716_v23, 8.507059e+37  ;;  %2596 = vrcp.f32 %v4719_v12  ;;  %vm1714_vm4 = vmor %vm1712_vm2, %vm1713_vm15 }
 0x215   : > { %v1711_v57 = vadd.f32 %v2591_v20, %v1710_v61  ;;  %v1719_v43 = vor.u32 1.1754944e-38, %v1718_v22  ;;  %v1694_v51 = vsub.f32 1.0, %v1693_v30  ;;  %vm1698_vm5 = vweird.f32 %v2593_v50 }
 0x216   : > { %1823 = vst.msk [vmem:[%s3688_s4 + $0x1c0] sm:$0xff] %vm230_vm0, %v1661_v44  ;;  %v1730_v62 = vsel %vm1729_vm1, %v2589_v46, %v1726_v15  ;;  %v2595_v41 = vpop.eup %2594  ;;  %v1701_v52 = vand.u32 2147483647, %v4679_v21  ;;  %v1703_v18 = vand.u32 2147483648, %v4679_v21  ;;  %vm1697_vm6 = vweird.f32 %v4679_v21 }
 0x217   : > { %v1735_v56 = vsel %vm4724_vm14, %v1734_v8, %v1730_v62  ;;  %v1715_v49 = vsel %vm1714_vm4, %v2591_v20, %v1711_v57  ;;  %v1695_v17 = vmul.f32 %v2593_v50, %v1694_v51  ;;  %v1753_v6 = vmul.f32 %v2595_v41, %v4702_v1  ;;  %vm1699_vm7 = vmor %vm1697_vm6, %vm1698_vm5 }
 0x218   : > { %v1736_v39 = vmul.f32 %v5232_v33, %v1735_v56  ;;  %v1720_v55 = vsel %vm4731_vm3, %v1719_v43, %v1715_v49  ;;  %vm1702_vm8 = vcmp.eq.f32.partialorder %v1701_v52, 8.507059e+37  ;;  %v1704_v60 = vor.u32 1.1754944e-38, %v1703_v18 }
 0x219   : > { %v1721_v19 = vmul.f32 %v5233_v58, %v1720_v55  ;;  %v1696_v40 = vadd.f32 %v2593_v50, %v1695_v17  ;;  %v1754_v47 = vsub.f32 1.0, %v1753_v6  ;;  %v1761_v27 = vand.u32 2147483647, %v4702_v1 }
 0x21a   : > { %1828 = vst.msk [vmem:[%s3688_s4 + $0x1e8] sm:$0xff] %vm230_vm0, %v1736_v39  ;;  %v2597_v7 = vpop.eup %2596  ;;  %v1763_v4 = vand.u32 2147483648, %v4702_v1  ;;  %vm1758_vm9 = vweird.f32 %v2595_v41  ;;  %vm1757_vm10 = vweird.f32 %v4702_v1  ;;  %v1748_v32 = vand.u32 2147483648, %v4719_v12 }
 0x21b   : > { %1827 = vst.msk [vmem:[%s3688_s4 + $0x1e0] sm:$0xff] %vm230_vm0, %v1721_v19  ;;  %v1700_v16 = vsel %vm1699_vm7, %v2593_v50, %v1696_v40  ;;  %v1755_v0 = vmul.f32 %v2595_v41, %v1754_v47  ;;  %v1738_v38 = vmul.f32 %v2597_v7, %v4719_v12  ;;  %vm1759_vm11 = vmor %vm1757_vm10, %vm1758_vm9  ;;  %vm1762_vm12 = vcmp.eq.f32.partialorder %v1761_v27, 8.507059e+37 }
 0x21c   : > { %v1705_v54 = vsel %vm1702_vm8, %v1704_v60, %v1700_v16  ;;  %v1764_v46 = vor.u32 1.1754944e-38, %v1763_v4  ;;  %vm1743_vm13 = vweird.f32 %v2597_v7  ;;  %v1746_v2 = vand.u32 2147483647, %v4719_v12 }
 0x21d   : > { %v1706_v21 = vmul.f32 %v5234_v24, %v1705_v54  ;;  %v1756_v48 = vadd.f32 %v2595_v41, %v1755_v0  ;;  %v1739_v34 = vsub.f32 1.0, %v1738_v38  ;;  %vm1742_vm14 = vweird.f32 %v4719_v12 }
 0x21e   : > { %vm1744_vm15 = vmor %vm1742_vm14, %vm1743_vm13  ;;  %v1749_v1 = vor.u32 1.1754944e-38, %v1748_v32  ;;  %vm1747_vm1 = vcmp.eq.f32.partialorder %v1746_v2, 8.507059e+37 }
 0x21f   : > { %1826 = vst.msk [vmem:[%s3688_s4 + $0x1d8] sm:$0xff] %vm230_vm0, %v1706_v21  ;;  %v1760_v42 = vsel %vm1759_vm11, %v2595_v41, %v1756_v48  ;;  %v1740_v53 = vmul.f32 %v2597_v7, %v1739_v34 }
 0x220   : > { %v1765_v20 = vsel %vm1762_vm12, %v1764_v46, %v1760_v42 }
 0x221   : > { %v1766_v11 = vmul.f32 %v3694_v9, %v1765_v20  ;;  %v1741_v37 = vadd.f32 %v2597_v7, %v1740_v53 }
 0x223   : > { %1830 = vst.msk [vmem:[%s3688_s4 + $0x1f8] sm:$0xff] %vm230_vm0, %v1766_v11  ;;  %v1745_v14 = vsel %vm1744_vm15, %v2597_v7, %v1741_v37  ;;  %1837 = sbr.rel (!%p2772_p5) target bundleno = 616 (0x268), region = 28 }
 0x224   : > { %v1750_v10 = vsel %vm1747_vm1, %v1749_v1, %v1745_v14 }
 0x225   : > { %v1751_v31 = vmul.f32 %v5235_v13, %v1750_v10 }
 0x227   : > { %1829 = vst.msk [vmem:[%s3688_s4 + $0x1f0] sm:$0xff] %vm230_vm0, %v1751_v31 }
 0x228   : > { %s5254_s5 = smov (!%p1840_p11, %s1839_s5), 64 }
 0x229   : > { %s2203_s16 = sshll.u32 %s5254_s5, 3 }
 0x22a   : > { %p2206_p12 = scmp.eq.s32.totalorder %s2203_s16, 0 }
 0x22b   : > { %s4783_s17 = sshrl.u32 (!%p2206_p12), %s5254_s5, 5 }
 0x22c   : > { %1850 = sbr.rel (%p2206_p12) target bundleno = 616 (0x268), region = 32  ;;  %p2207_p13 = scmp.le.s32.totalorder (!%p2206_p12), %s4783_s17, 0 }
 0x231   : > { %2138 = sbr.rel (%p2207_p13) target bundleno = 599 (0x257), region = 108  ;;  %s5236_s9 = smov (!%p2207_p13), %s4780_s20 }
 0x232   : > { %s5237_s22 = smov (!%p2207_p13), %s3688_s4  ;;  %s4792_s23 = smov (!%p2207_p13), 0  }
 0x233   : > { %s4794_s24 = smov (!%p2207_p13), 0  }
 0x236 LB: >> { %v1975_v9 = vld [vmem:[%s2692_s22] sm:$0xff]  ;;  %v1977_v29 = vld [vmem:[%s2692_s22 + $0x8] sm:$0xff]  ;;  %v1979_v26 = vld [vmem:[%s2692_s22 + $0x10] sm:$0xff]  ;;  %s2039_s25 = sadd.s32 1, %s2696_s23  ;;  %s1969_s24 = sadd.s32 1, %s2700_s24   ;;  %s2700_s24 = sphi %s4794_s24, %s1969_s24   ;;  %s2696_s23 = sphi %s4792_s23, %s5240_s23   ;;  %s2692_s22 = sphi %s5237_s22, %s5239_s22   ;;  %s2688_s9 = sphi %s5236_s9, %s5238_s9  }
 0x237   : >> { %1976 = vst [vmem:[%s2688_s9] sm:$0xff] %v1975_v9  ;;  %v1981_v63 = vld [vmem:[%s2692_s22 + $0x18] sm:$0xff]  ;;  %p2040_p0 = scmp.ge.s32.totalorder %s2039_s25, %s4783_s17  ;;  %v1983_v36 = vld [vmem:[%s2692_s22 + $0x20] sm:$0xff]  ;;  %v1985_v23 = vld [vmem:[%s2692_s22 + $0x28] sm:$0xff]  ;;  %p1968_p1 = scmp.ge.s32.totalorder %s1969_s24, %s4783_s17 }
 0x238   : >> { %1978 = vst [vmem:[%s2688_s9 + $0x8] sm:$0xff] %v1977_v29  ;;  %v1987_v22 = vld [vmem:[%s2692_s22 + $0x30] sm:$0xff]  ;;  %v1989_v35 = vld [vmem:[%s2692_s22 + $0x38] sm:$0xff]  ;;  %v1991_v59 = vld [vmem:[%s2692_s22 + $0x40] sm:$0xff] }
 0x239   : >> { %1980 = vst [vmem:[%s2688_s9 + $0x10] sm:$0xff] %v1979_v26  ;;  %s5256_s25 = smov (%p2040_p0, %s2039_s25), 0  ;;  %v1993_v28 = vld [vmem:[%s2692_s22 + $0x48] sm:$0xff]  ;;  %v1995_v12 = vld [vmem:[%s2692_s22 + $0x50] sm:$0xff]  ;;  %v1997_v50 = vld [vmem:[%s2692_s22 + $0x58] sm:$0xff] }
 0x23a   : >> { %1982 = vst [vmem:[%s2688_s9 + $0x18] sm:$0xff] %v1981_v63  ;;  %s2208_s26 = sshll.u32 %s5256_s25, 8  ;;  %v1999_v5 = vld [vmem:[%s2692_s22 + $0x60] sm:$0xff]  ;;  %v2001_v45 = vld [vmem:[%s2692_s22 + $0x68] sm:$0xff]  ;;  %v2003_v3 = vld [vmem:[%s2692_s22 + $0x70] sm:$0xff]  ;;  %s5240_s23 = smov %s5256_s25 }
 0x23b   : >> { %1984 = vst [vmem:[%s2688_s9 + $0x20] sm:$0xff] %v1983_v36  ;;  %s4826_s27 = scalar_lea.vmem %s3688_s4, %s2208_s26 [#allocation2]   ;;  %s4829_s28 = scalar_lea.vmem %s4780_s20, %s2208_s26   ;;  %v2005_v44 = vld [vmem:[%s2692_s22 + $0x78] sm:$0xff]  ;;  %v2007_v15 = vld [vmem:[%s2692_s22 + $0x80] sm:$0xff]  ;;  %v2009_v61 = vld [vmem:[%s2692_s22 + $0x88] sm:$0xff] }
 0x23c   : >> { %1986 = vst [vmem:[%s2688_s9 + $0x28] sm:$0xff] %v1985_v23  ;;  %v2011_v30 = vld [vmem:[%s2692_s22 + $0x90] sm:$0xff]  ;;  %v2013_v8 = vld [vmem:[%s2692_s22 + $0x98] sm:$0xff]  ;;  %v2015_v25 = vld [vmem:[%s2692_s22 + $0xa0] sm:$0xff] }
 0x23d   : >> { %1988 = vst [vmem:[%s2688_s9 + $0x30] sm:$0xff] %v1987_v22  ;;  %v2017_v62 = vld [vmem:[%s2692_s22 + $0xa8] sm:$0xff]  ;;  %v2019_v57 = vld [vmem:[%s2692_s22 + $0xb0] sm:$0xff]  ;;  %v2021_v43 = vld [vmem:[%s2692_s22 + $0xb8] sm:$0xff] }
 0x23e   : >> { %1990 = vst [vmem:[%s2688_s9 + $0x38] sm:$0xff] %v1989_v35  ;;  %v2023_v51 = vld [vmem:[%s2692_s22 + $0xc0] sm:$0xff]  ;;  %v2025_v41 = vld [vmem:[%s2692_s22 + $0xc8] sm:$0xff]  ;;  %v2027_v56 = vld [vmem:[%s2692_s22 + $0xd0] sm:$0xff] }
 0x23f   : >> { %1992 = vst [vmem:[%s2688_s9 + $0x40] sm:$0xff] %v1991_v59  ;;  %v2029_v52 = vld [vmem:[%s2692_s22 + $0xd8] sm:$0xff]  ;;  %v2031_v18 = vld [vmem:[%s2692_s22 + $0xe0] sm:$0xff]  ;;  %v2033_v33 = vld [vmem:[%s2692_s22 + $0xe8] sm:$0xff] }
 0x240   : >> { %1994 = vst [vmem:[%s2688_s9 + $0x48] sm:$0xff] %v1993_v28  ;;  %v2035_v39 = vld [vmem:[%s2692_s22 + $0xf0] sm:$0xff]  ;;  %v2037_v49 = vld [vmem:[%s2692_s22 + $0xf8] sm:$0xff]  ;;  %s5239_s22 = smov %s4826_s27 }
 0x241   : >> { %1996 = vst [vmem:[%s2688_s9 + $0x50] sm:$0xff] %v1995_v12 }
 0x242   : >> { %1998 = vst [vmem:[%s2688_s9 + $0x58] sm:$0xff] %v1997_v50 }
 0x243   : >> { %2000 = vst [vmem:[%s2688_s9 + $0x60] sm:$0xff] %v1999_v5 }
 0x244   : >> { %2002 = vst [vmem:[%s2688_s9 + $0x68] sm:$0xff] %v2001_v45 }
 0x245   : >> { %2004 = vst [vmem:[%s2688_s9 + $0x70] sm:$0xff] %v2003_v3 }
 0x246   : >> { %2006 = vst [vmem:[%s2688_s9 + $0x78] sm:$0xff] %v2005_v44 }
 0x247   : >> { %2008 = vst [vmem:[%s2688_s9 + $0x80] sm:$0xff] %v2007_v15 }
 0x248   : >> { %2010 = vst [vmem:[%s2688_s9 + $0x88] sm:$0xff] %v2009_v61 }
 0x249   : >> { %2012 = vst [vmem:[%s2688_s9 + $0x90] sm:$0xff] %v2011_v30 }
 0x24a   : >> { %2014 = vst [vmem:[%s2688_s9 + $0x98] sm:$0xff] %v2013_v8 }
 0x24b   : >> { %2016 = vst [vmem:[%s2688_s9 + $0xa0] sm:$0xff] %v2015_v25 }
 0x24c   : >> { %2018 = vst [vmem:[%s2688_s9 + $0xa8] sm:$0xff] %v2017_v62 }
 0x24d   : >> { %2020 = vst [vmem:[%s2688_s9 + $0xb0] sm:$0xff] %v2019_v57 }
 0x24e   : >> { %2022 = vst [vmem:[%s2688_s9 + $0xb8] sm:$0xff] %v2021_v43 }
 0x24f   : >> { %2024 = vst [vmem:[%s2688_s9 + $0xc0] sm:$0xff] %v2023_v51 }
 0x250   : >> { %2026 = vst [vmem:[%s2688_s9 + $0xc8] sm:$0xff] %v2025_v41 }
 0x251   : >> { %2028 = vst [vmem:[%s2688_s9 + $0xd0] sm:$0xff] %v2027_v56 }
 0x252   : >> { %2030 = vst [vmem:[%s2688_s9 + $0xd8] sm:$0xff] %v2029_v52  ;;  %1971 = sbr.rel (!%p1968_p1) target bundleno = 566 (0x236), region = 114 }
 0x253   : >> { %2032 = vst [vmem:[%s2688_s9 + $0xe0] sm:$0xff] %v2031_v18 }
 0x254   : >> { %2034 = vst [vmem:[%s2688_s9 + $0xe8] sm:$0xff] %v2033_v33 }
 0x255   : >> { %2036 = vst [vmem:[%s2688_s9 + $0xf0] sm:$0xff] %v2035_v39 }
 0x256   : >> { %2038 = vst [vmem:[%s2688_s9 + $0xf8] sm:$0xff] %v2037_v49  ;;  %s5238_s9 = smov %s4829_s28 }
 0x257 PF: > { %s4894_s29 = sand.u32 31, %s5254_s5   ;;  %s2218_s30 = sshll.u32 %s4783_s17, 8 }
 0x258   : > { %s2050_s2 = scalar_lea.vmem %s3688_s4, %s2218_s30 [#allocation2]   ;;  %s2052_s3 = scalar_lea.vmem %s4780_s20, %s2218_s30  }
 0x259   : > { %p2213_p2 = scmp.le.s32.totalorder %s4894_s29, 0 }
 0x25a   : > { %s2702_s6 = smov (!%p2213_p2), %s2052_s3   ;;  %s2706_s8 = smov (!%p2213_p2), %s2050_s2  }
 0x25b   : > { %2152 = sbr.rel (%p2213_p2) target bundleno = 616 (0x268), region = 119  ;;  %s2710_s15 = smov (!%p2213_p2), 0  }
 0x25c   : > { %s2714_s16 = smov (!%p2213_p2), 0  }
 0x260 LB: >> { %v2062_v17 = vld [vmem:[%s2708_s8] sm:$0xff]  ;;  %s2064_s5 = sadd.s32 1, %s2712_s15  ;;  %s2056_s16 = sadd.s32 1, %s2716_s16   ;;  %s2716_s16 = sphi %s2714_s16, %s2056_s16   ;;  %s2712_s15 = sphi %s2710_s15, %s2711_s15   ;;  %s2708_s8 = sphi %s2706_s8, %s2069_s8   ;;  %s2704_s6 = sphi %s2702_s6, %s2070_s6  }
 0x261   : >> { %2063 = vst [vmem:[%s2704_s6] sm:$0xff] %v2062_v17  ;;  %p2065_p3 = scmp.ge.s32.totalorder %s2064_s5, %s4894_s29  ;;  %p2055_p4 = scmp.ge.s32.totalorder %s2056_s16, %s4894_s29 }
 0x263   : >> { %s5258_s5 = smov (%p2065_p3, %s2064_s5), 0  ;;  %2058 = sbr.rel (!%p2055_p4) target bundleno = 608 (0x260), region = 125 }
 0x264   : >> { %s2214_s4 = sshll.u32 %s5258_s5, 3  ;;  %s2711_s15 = smov %s5258_s5  }
 0x265   : >> { %s2069_s8 = scalar_lea.vmem %s2050_s2, %s2214_s4 [#allocation2]   ;;  %s2070_s6 = scalar_lea.vmem %s2052_s3, %s2214_s4  }
 0x268 PF: > { %s11_s12 = sadd.s32 1, %s2684_s12   ;;  %s5241_s6 = smov %s2664_s7 }
 0x269   : > { %p8_p5 = scmp.ge.s32.totalorder %s11_s12, 8   ;;  %s5242_s7 = smov %s2783_s21 }
 0x26a   : > { %s5243_s8 = smov %s2676_s10  ;;  %s5244_s9 = smov %s2680_s11 }
 0x26b   : > { %s5245_s10 = smov %s5248_s13  ;;  %s5246_s11 = smov %s5252_s14 }
 0x26c   :  { %10 = sbr.rel (!%p8_p5) target bundleno = 4 (0x4), region = 136 }

</bundles_post_ra>
